<compile_context>
chip_gen: v6e
topology: v6e:2x2x1
jax: 0.10.0
libtpu: 0.0.40
codegen_flags: <defaults>
</compile_context>

<pallas_src>
import functools
import math

import jax
import jax.numpy as jnp
from jax import lax
from jax.experimental import pallas as pl
from jax.experimental.pallas import tpu as pltpu

# ----------------------------- model config ---------------------------------
VOCAB_SIZE = 32
PAD_TOKEN_ID = 1
HIDDEN = 32          # esm.config.hidden_size (== self.embed_size)
NUM_LAYERS = 2
NUM_HEADS = 2
HEAD_DIM = HIDDEN // NUM_HEADS
FFN = 64
MAX_POS = 64
LN_EPS = 1e-5


# ------------------------------ kernel helpers -------------------------------
def _layer_norm(x, w, b):
    mu = jnp.mean(x, axis=-1, keepdims=True)
    var = jnp.mean((x - mu) ** 2, axis=-1, keepdims=True)
    return (x - mu) * lax.rsqrt(var + LN_EPS) * w + b


def _bf16(x):
    return x.astype(jnp.bfloat16)


# --------------------------- fused forward kernel ----------------------------
def fused_forward_kernel(ids_ref, bias_ref, pos_ref,
                         tok_ref,
                         ln1w_ref, ln1b_ref, wqkv_ref, bqkv_ref, wo_ref, bo_ref,
                         ln2w_ref, ln2b_ref, w1_ref, b1_ref, w2_ref, b2_ref,
                         fw_ref, fb_ref,
                         o_ref, *, seq, vocab, hidden,
                         num_layers, num_heads, head_dim):
    # ---- embedding for this batch element: one-hot matmul + positional slab ----
    ids = ids_ref[0]                                          # (S, 1) int32
    vocab_iota = lax.broadcasted_iota(jnp.int32, (seq, vocab), 1)
    one_hot = (ids == vocab_iota).astype(jnp.bfloat16)        # (S, V), exact in bf16
    x = jnp.dot(one_hot, tok_ref[...],
                preferred_element_type=jnp.float32)           # (S, H) f32
    x = x + pos_ref[...]                                      # (S, H)

    bias = bias_ref[0]                                        # (1, S) additive key mask

    for li in range(num_layers):
        # --- self-attention (pre-LN); 1/sqrt(head_dim) folded into W_q/b_q ---
        h = _bf16(_layer_norm(x, ln1w_ref[li], ln1b_ref[li]))
        qkv = jnp.dot(h, wqkv_ref[li],
                      preferred_element_type=jnp.float32) + bqkv_ref[li]   # (S, 3H)

        attn = jnp.zeros((seq, hidden), jnp.float32)
        for hh in range(num_heads):
            lo = hh * head_dim
            q = _bf16(qkv[:, lo:lo + head_dim])
            k = _bf16(qkv[:, hidden + lo:hidden + lo + head_dim])
            v = _bf16(qkv[:, 2 * hidden + lo:2 * hidden + lo + head_dim])
            # q @ k^T without materializing k.T: contract dim 1 of both operands.
            s = lax.dot_general(q, k, (((1,), (1,)), ((), ())),
                                preferred_element_type=jnp.float32) + bias
            s = s - jnp.max(s, axis=-1, keepdims=True)
            e = jnp.exp(s)
            p = _bf16(e / jnp.sum(e, axis=-1, keepdims=True))    # exact softmax (f32)
            o_h = jnp.dot(p, v, preferred_element_type=jnp.float32)          # (S, hd)
            # Fold head output through the matching row-block of the full Wo.
            attn = attn + jnp.dot(_bf16(o_h), wo_ref[li, lo:lo + head_dim, :],
                                  preferred_element_type=jnp.float32)        # (S, H)
        x = x + attn + bo_ref[li]

        # --- feed-forward (pre-LN) ---
        h2 = _bf16(_layer_norm(x, ln2w_ref[li], ln2b_ref[li]))
        f = jnp.dot(h2, w1_ref[li], preferred_element_type=jnp.float32) + b1_ref[li]
        f = jax.nn.gelu(f, approximate=True)   # TODO(synk): HF ESM uses exact erf GELU
        f = jnp.dot(_bf16(f), w2_ref[li],
                    preferred_element_type=jnp.float32) + b2_ref[li]
        x = x + f

    # --- final LayerNorm + store this batch element's (S, H) block ---
    o_ref[0] = _layer_norm(x, fw_ref[...], fb_ref[...])


# ------------------------------ pallas wrapper --------------------------------
_WEIGHT_ORDER = ("tok_emb", "ln1_w", "ln1_b", "wqkv", "bqkv", "wo", "bo",
                 "ln2_w", "ln2_b", "w1", "b1", "w2", "b2",
                 "final_ln_w", "final_ln_b")


def _prepare_weights(params):
    """Fuse Q/K/V into one (L,H,3H) weight, fold 1/sqrt(head_dim) into W_q/b_q,
    and cast all matmul operands to bf16 ONCE (biases / LN params stay f32)."""
    scale = 1.0 / math.sqrt(HEAD_DIM)
    wqkv = jnp.concatenate([params["wq"] * scale, params["wk"], params["wv"]],
                           axis=-1)                                  # (L, H, 3H)
    bqkv = jnp.concatenate([params["bq"] * scale, params["bk"], params["bv"]],
                           axis=-1)                                  # (L, 1, 3H)
    return {
        "tok_emb": params["tok_emb"].astype(jnp.bfloat16),
        "ln1_w": params["ln1_w"], "ln1_b": params["ln1_b"],
        "wqkv": wqkv.astype(jnp.bfloat16), "bqkv": bqkv.astype(jnp.float32),
        "wo": params["wo"].astype(jnp.bfloat16), "bo": params["bo"],
        "ln2_w": params["ln2_w"], "ln2_b": params["ln2_b"],
        "w1": params["w1"].astype(jnp.bfloat16), "b1": params["b1"],
        "w2": params["w2"].astype(jnp.bfloat16), "b2": params["b2"],
        "final_ln_w": params["final_ln_w"], "final_ln_b": params["final_ln_b"],
    }


def deepcoi_embedding_forward(params, input_ids, attention_mask=None):
    """Mirrors DeepCOIEmbedding.forward: returns the ESM sequence output (B,S,H)."""
    if attention_mask is None:
        attention_mask = (input_ids != PAD_TOKEN_ID).astype(jnp.float32)
    B, S = input_ids.shape

    ids3 = input_ids.reshape(B, S, 1).astype(jnp.int32)
    # Per-batch additive key mask.  Query rows at pad positions still attend
    # over valid keys (matches HF ESM extended-attention-mask behaviour).
    key_bias = jnp.where(attention_mask > 0.5, 0.0, -1e9).astype(jnp.float32)
    key_bias = key_bias.reshape(B, 1, S)
    pos_slab = params["pos_emb"][:S].astype(jnp.float32)            # (S, H)

    w = _prepare_weights(params)
    weights = tuple(w[name] for name in _WEIGHT_ORDER)
    kernel_inputs = (ids3, key_bias, pos_slab) + weights

    def _bcast_spec(arr):
        nd = arr.ndim
        return pl.BlockSpec(arr.shape, lambda b, nd=nd: (0,) * nd)

    in_specs = [
        pl.BlockSpec((1, S, 1), lambda b: (b, 0, 0)),   # input_ids (per batch)
        pl.BlockSpec((1, 1, S), lambda b: (b, 0, 0)),   # key-mask bias (per batch)
        _bcast_spec(pos_slab),
    ] + [_bcast_spec(a) for a in weights]

    kernel = functools.partial(
        fused_forward_kernel, seq=S, vocab=VOCAB_SIZE, hidden=HIDDEN,
        num_layers=NUM_LAYERS, num_heads=NUM_HEADS, head_dim=HEAD_DIM)

    out = pl.pallas_call(
        kernel,
        out_shape=jax.ShapeDtypeStruct((B, S, HIDDEN), jnp.float32),
        grid=(B,),
        in_specs=in_specs,
        out_specs=pl.BlockSpec((1, S, HIDDEN), lambda b: (b, 0, 0)),
        compiler_params=pltpu.CompilerParams(
            dimension_semantics=("parallel",),          # batch axis -> both v7x TCs
            vmem_limit_bytes=32 * 1024 * 1024),         # resident footprint << 1 MiB
    )(*kernel_inputs)

    return out   # sequence_output (B, S, H)


# ------------------------------ parameter init --------------------------------
def init_params(key):
    def normal(k, shape, scale=0.02):
        return (scale * jax.random.normal(k, shape)).astype(jnp.float32)

    L, H, F = NUM_LAYERS, HIDDEN, FFN
    keys = jax.random.split(key, 2 + L)

    wq, wk, wv, wo, w1, w2 = [], [], [], [], [], []
    for li in range(L):
        lk = jax.random.split(keys[2 + li], 6)
        wq.append(normal(lk[0], (H, H)))
        wk.append(normal(lk[1], (H, H)))
        wv.append(normal(lk[2], (H, H)))
        wo.append(normal(lk[3], (H, H)))
        w1.append(normal(lk[4], (H, F)))
        w2.append(normal(lk[5], (F, H)))

    return {
        "tok_emb": normal(keys[0], (VOCAB_SIZE, H)),
        "pos_emb": normal(keys[1], (MAX_POS, H)),
        "wq": jnp.stack(wq), "bq": jnp.zeros((L, 1, H), jnp.float32),
        "wk": jnp.stack(wk), "bk": jnp.zeros((L, 1, H), jnp.float32),
        "wv": jnp.stack(wv), "bv": jnp.zeros((L, 1, H), jnp.float32),
        "wo": jnp.stack(wo), "bo": jnp.zeros((L, 1, H), jnp.float32),
        "ln1_w": jnp.ones((L, 1, H), jnp.float32),
        "ln1_b": jnp.zeros((L, 1, H), jnp.float32),
        "ln2_w": jnp.ones((L, 1, H), jnp.float32),
        "ln2_b": jnp.zeros((L, 1, H), jnp.float32),
        "w1": jnp.stack(w1), "b1": jnp.zeros((L, 1, F), jnp.float32),
        "w2": jnp.stack(w2), "b2": jnp.zeros((L, 1, H), jnp.float32),
        "final_ln_w": jnp.ones((1, H), jnp.float32),
        "final_ln_b": jnp.zeros((1, H), jnp.float32),
    }


# ----------------------------------- main -------------------------------------
if __name__ == "__main__":
    key = jax.random.PRNGKey(0)
    k_params, k_ids = jax.random.split(key)

    params = init_params(k_params)

    B, S = 2, 8
    input_ids = jax.random.randint(k_ids, (B, S), 0, VOCAB_SIZE, dtype=jnp.int32)
    # Force trailing pad tokens so the auto-generated attention mask matters.
    input_ids = input_ids.at[:, -2:].set(PAD_TOKEN_ID)

    # attention_mask=None path: computed from pad_token_id inside forward.
    sequence_output = deepcoi_embedding_forward(params, input_ids, attention_mask=None)
    jax.block_until_ready(sequence_output)

    assert sequence_output.shape == (B, S, HIDDEN)
    assert sequence_output.dtype == jnp.float32
    assert bool(jnp.all(jnp.isfinite(sequence_output)))
    print("KERNEL_OK")
</pallas_src>

<mosaic_0001>
module attributes {stable_mosaic.version = 11 : i64} {
  func.func @fused_forward_kernel(%arg0: i32, %arg1: memref<1x8x1xi32, #tpu.memory_space<vmem>>, %arg2: memref<1x1x8xf32, #tpu.memory_space<vmem>>, %arg3: memref<8x32xf32, #tpu.memory_space<vmem>>, %arg4: memref<32x32xbf16, #tpu.memory_space<vmem>>, %arg5: memref<2x1x32xf32, #tpu.memory_space<vmem>>, %arg6: memref<2x1x32xf32, #tpu.memory_space<vmem>>, %arg7: memref<2x32x96xbf16, #tpu.memory_space<vmem>>, %arg8: memref<2x1x96xf32, #tpu.memory_space<vmem>>, %arg9: memref<2x32x32xbf16, #tpu.memory_space<vmem>>, %arg10: memref<2x1x32xf32, #tpu.memory_space<vmem>>, %arg11: memref<2x1x32xf32, #tpu.memory_space<vmem>>, %arg12: memref<2x1x32xf32, #tpu.memory_space<vmem>>, %arg13: memref<2x32x64xbf16, #tpu.memory_space<vmem>>, %arg14: memref<2x1x64xf32, #tpu.memory_space<vmem>>, %arg15: memref<2x64x32xbf16, #tpu.memory_space<vmem>>, %arg16: memref<2x1x32xf32, #tpu.memory_space<vmem>>, %arg17: memref<1x32xf32, #tpu.memory_space<vmem>>, %arg18: memref<1x32xf32, #tpu.memory_space<vmem>>, %arg19: memref<1x8x32xf32, #tpu.memory_space<vmem>>) attributes {dimension_semantics = [#tpu.dimension_semantics<parallel>], iteration_bounds = array<i64: 2>, scalar_prefetch = 0 : i64, scratch_operands = 0 : i64, tpu.core_type = #tpu.core_type<tc>, window_params = [{transform_indices = @transform_0, window_bounds = array<i64: 1, 8, 1>}, {transform_indices = @transform_1, window_bounds = array<i64: 1, 1, 8>}, {pipeline_mode = #tpu.pipeline_mode<synchronous>, transform_indices = @transform_2, window_bounds = array<i64: 8, 32>}, {pipeline_mode = #tpu.pipeline_mode<synchronous>, transform_indices = @transform_3, window_bounds = array<i64: 32, 32>}, {pipeline_mode = #tpu.pipeline_mode<synchronous>, transform_indices = @transform_4, window_bounds = array<i64: 2, 1, 32>}, {pipeline_mode = #tpu.pipeline_mode<synchronous>, transform_indices = @transform_5, window_bounds = array<i64: 2, 1, 32>}, {pipeline_mode = #tpu.pipeline_mode<synchronous>, transform_indices = @transform_6, window_bounds = array<i64: 2, 32, 96>}, {pipeline_mode = #tpu.pipeline_mode<synchronous>, transform_indices = @transform_7, window_bounds = array<i64: 2, 1, 96>}, {pipeline_mode = #tpu.pipeline_mode<synchronous>, transform_indices = @transform_8, window_bounds = array<i64: 2, 32, 32>}, {pipeline_mode = #tpu.pipeline_mode<synchronous>, transform_indices = @transform_9, window_bounds = array<i64: 2, 1, 32>}, {pipeline_mode = #tpu.pipeline_mode<synchronous>, transform_indices = @transform_10, window_bounds = array<i64: 2, 1, 32>}, {pipeline_mode = #tpu.pipeline_mode<synchronous>, transform_indices = @transform_11, window_bounds = array<i64: 2, 1, 32>}, {pipeline_mode = #tpu.pipeline_mode<synchronous>, transform_indices = @transform_12, window_bounds = array<i64: 2, 32, 64>}, {pipeline_mode = #tpu.pipeline_mode<synchronous>, transform_indices = @transform_13, window_bounds = array<i64: 2, 1, 64>}, {pipeline_mode = #tpu.pipeline_mode<synchronous>, transform_indices = @transform_14, window_bounds = array<i64: 2, 64, 32>}, {pipeline_mode = #tpu.pipeline_mode<synchronous>, transform_indices = @transform_15, window_bounds = array<i64: 2, 1, 32>}, {pipeline_mode = #tpu.pipeline_mode<synchronous>, transform_indices = @transform_16, window_bounds = array<i64: 1, 32>}, {pipeline_mode = #tpu.pipeline_mode<synchronous>, transform_indices = @transform_17, window_bounds = array<i64: 1, 32>}, {transform_indices = @transform_18, window_bounds = array<i64: 1, 8, 32>}]} {
    %c0 = arith.constant 0 : index
    %c0_0 = arith.constant 0 : index
    %c0_1 = arith.constant 0 : index
    %0 = vector.load %arg1[%c0, %c0_0, %c0_1] : memref<1x8x1xi32, #tpu.memory_space<vmem>>, vector<1x8x1xi32>
    %1 = vector.shape_cast %0 : vector<1x8x1xi32> to vector<8x1xi32>
    %2 = tpu.iota {dimensions = array<i32: 1>} : vector<8x32xi32>
    %3 = vector.broadcast %1 : vector<8x1xi32> to vector<8x32xi32>
    %4 = arith.cmpi eq, %3, %2 : vector<8x32xi32>
    %5 = arith.extui %4 : vector<8x32xi1> to vector<8x32xi32>
    %6 = arith.sitofp %5 : vector<8x32xi32> to vector<8x32xf32>
    %7 = arith.truncf %6 : vector<8x32xf32> to vector<8x32xbf16>
    %c0_2 = arith.constant 0 : index
    %c0_3 = arith.constant 0 : index
    %8 = vector.load %arg4[%c0_2, %c0_3] : memref<32x32xbf16, #tpu.memory_space<vmem>>, vector<32x32xbf16>
    %cst = arith.constant dense<0.000000e+00> : vector<8x32xf32>
    %9 = tpu.matmul %7, %8, %cst {dimension_numbers = #tpu.dot_dimension_numbers<[1], [0], [0], [1], [0, 0, 1, 1], [], []>} : vector<8x32xbf16>, vector<32x32xbf16>, vector<8x32xf32> -> vector<8x32xf32>
    %c0_4 = arith.constant 0 : index
    %c0_5 = arith.constant 0 : index
    %10 = vector.load %arg3[%c0_4, %c0_5] : memref<8x32xf32, #tpu.memory_space<vmem>>, vector<8x32xf32>
    %11 = arith.addf %9, %10 : vector<8x32xf32>
    %c0_6 = arith.constant 0 : index
    %c0_7 = arith.constant 0 : index
    %c0_8 = arith.constant 0 : index
    %12 = vector.load %arg2[%c0_6, %c0_7, %c0_8] : memref<1x1x8xf32, #tpu.memory_space<vmem>>, vector<1x1x8xf32>
    %13 = vector.shape_cast %12 : vector<1x1x8xf32> to vector<1x8xf32>
    %c0_9 = arith.constant 0 : index
    %c0_10 = arith.constant 0 : index
    %c0_11 = arith.constant 0 : index
    %14 = vector.load %arg5[%c0_9, %c0_10, %c0_11] : memref<2x1x32xf32, #tpu.memory_space<vmem>>, vector<1x1x32xf32>
    %15 = vector.shape_cast %14 : vector<1x1x32xf32> to vector<1x32xf32>
    %c0_12 = arith.constant 0 : index
    %c0_13 = arith.constant 0 : index
    %c0_14 = arith.constant 0 : index
    %16 = vector.load %arg6[%c0_12, %c0_13, %c0_14] : memref<2x1x32xf32, #tpu.memory_space<vmem>>, vector<1x1x32xf32>
    %17 = vector.shape_cast %16 : vector<1x1x32xf32> to vector<1x32xf32>
    %cst_15 = arith.constant dense<0.000000e+00> : vector<8xf32>
    %18 = vector.multi_reduction <add>, %11, %cst_15 [1] : vector<8x32xf32> to vector<8xf32>
    %19 = vector.shape_cast %18 : vector<8xf32> to vector<8x1xf32>
    %cst_16 = arith.constant 3.200000e+01 : f32
    %20 = vector.broadcast %cst_16 : f32 to vector<8x1xf32>
    %21 = arith.divf %19, %20 : vector<8x1xf32>
    %22 = vector.broadcast %21 : vector<8x1xf32> to vector<8x32xf32>
    %23 = arith.subf %11, %22 : vector<8x32xf32>
    %24 = arith.mulf %23, %23 : vector<8x32xf32>
    %cst_17 = arith.constant dense<0.000000e+00> : vector<8xf32>
    %25 = vector.multi_reduction <add>, %24, %cst_17 [1] : vector<8x32xf32> to vector<8xf32>
    %26 = vector.shape_cast %25 : vector<8xf32> to vector<8x1xf32>
    %cst_18 = arith.constant 3.200000e+01 : f32
    %27 = vector.broadcast %cst_18 : f32 to vector<8x1xf32>
    %28 = arith.divf %26, %27 : vector<8x1xf32>
    %29 = vector.broadcast %21 : vector<8x1xf32> to vector<8x32xf32>
    %30 = arith.subf %11, %29 : vector<8x32xf32>
    %cst_19 = arith.constant 9.99999974E-6 : f32
    %31 = vector.broadcast %cst_19 : f32 to vector<8x1xf32>
    %32 = arith.addf %28, %31 : vector<8x1xf32>
    %33 = math.rsqrt %32 : vector<8x1xf32>
    %34 = vector.broadcast %33 : vector<8x1xf32> to vector<8x32xf32>
    %35 = arith.mulf %30, %34 : vector<8x32xf32>
    %36 = vector.broadcast %15 : vector<1x32xf32> to vector<8x32xf32>
    %37 = arith.mulf %35, %36 : vector<8x32xf32>
    %38 = vector.broadcast %17 : vector<1x32xf32> to vector<8x32xf32>
    %39 = arith.addf %37, %38 : vector<8x32xf32>
    %40 = arith.truncf %39 : vector<8x32xf32> to vector<8x32xbf16>
    %c0_20 = arith.constant 0 : index
    %c0_21 = arith.constant 0 : index
    %c0_22 = arith.constant 0 : index
    %41 = vector.load %arg7[%c0_20, %c0_21, %c0_22] : memref<2x32x96xbf16, #tpu.memory_space<vmem>>, vector<1x32x96xbf16>
    %42 = vector.shape_cast %41 : vector<1x32x96xbf16> to vector<32x96xbf16>
    %cst_23 = arith.constant dense<0.000000e+00> : vector<8x96xf32>
    %43 = tpu.matmul %40, %42, %cst_23 {dimension_numbers = #tpu.dot_dimension_numbers<[1], [0], [0], [1], [0, 0, 1, 1], [], []>} : vector<8x32xbf16>, vector<32x96xbf16>, vector<8x96xf32> -> vector<8x96xf32>
    %c0_24 = arith.constant 0 : index
    %c0_25 = arith.constant 0 : index
    %c0_26 = arith.constant 0 : index
    %44 = vector.load %arg8[%c0_24, %c0_25, %c0_26] : memref<2x1x96xf32, #tpu.memory_space<vmem>>, vector<1x1x96xf32>
    %45 = vector.shape_cast %44 : vector<1x1x96xf32> to vector<1x96xf32>
    %46 = vector.broadcast %45 : vector<1x96xf32> to vector<8x96xf32>
    %47 = arith.addf %43, %46 : vector<8x96xf32>
    %cst_27 = arith.constant 0.000000e+00 : f32
    %48 = vector.broadcast %cst_27 : f32 to vector<8x32xf32>
    %49 = vector.extract_strided_slice %47 {offsets = [0, 0], sizes = [8, 16], strides = [1, 1]} : vector<8x96xf32> to vector<8x16xf32>
    %50 = arith.truncf %49 : vector<8x16xf32> to vector<8x16xbf16>
    %51 = vector.extract_strided_slice %47 {offsets = [0, 32], sizes = [8, 16], strides = [1, 1]} : vector<8x96xf32> to vector<8x16xf32>
    %52 = arith.truncf %51 : vector<8x16xf32> to vector<8x16xbf16>
    %53 = vector.extract_strided_slice %47 {offsets = [0, 64], sizes = [8, 16], strides = [1, 1]} : vector<8x96xf32> to vector<8x16xf32>
    %54 = arith.truncf %53 : vector<8x16xf32> to vector<8x16xbf16>
    %cst_28 = arith.constant dense<0.000000e+00> : vector<8x8xf32>
    %55 = tpu.matmul %50, %52, %cst_28 {dimension_numbers = #tpu.dot_dimension_numbers<[1], [1], [0], [0], [0, 0, 1, 0], [], []>} : vector<8x16xbf16>, vector<8x16xbf16>, vector<8x8xf32> -> vector<8x8xf32>
    %56 = vector.broadcast %13 : vector<1x8xf32> to vector<8x8xf32>
    %57 = arith.addf %55, %56 : vector<8x8xf32>
    %cst_29 = arith.constant dense<0xFF800000> : vector<8xf32>
    %58 = vector.multi_reduction <maximumf>, %57, %cst_29 [1] : vector<8x8xf32> to vector<8xf32>
    %59 = vector.shape_cast %58 : vector<8xf32> to vector<8x1xf32>
    %60 = vector.broadcast %59 : vector<8x1xf32> to vector<8x8xf32>
    %61 = arith.subf %57, %60 : vector<8x8xf32>
    %62 = math.exp %61 : vector<8x8xf32>
    %cst_30 = arith.constant dense<0.000000e+00> : vector<8xf32>
    %63 = vector.multi_reduction <add>, %62, %cst_30 [1] : vector<8x8xf32> to vector<8xf32>
    %64 = vector.shape_cast %63 : vector<8xf32> to vector<8x1xf32>
    %65 = vector.broadcast %64 : vector<8x1xf32> to vector<8x8xf32>
    %66 = arith.divf %62, %65 : vector<8x8xf32>
    %67 = arith.truncf %66 : vector<8x8xf32> to vector<8x8xbf16>
    %cst_31 = arith.constant dense<0.000000e+00> : vector<8x16xf32>
    %68 = tpu.matmul %67, %54, %cst_31 {dimension_numbers = #tpu.dot_dimension_numbers<[1], [0], [0], [1], [0, 0, 1, 1], [], []>} : vector<8x8xbf16>, vector<8x16xbf16>, vector<8x16xf32> -> vector<8x16xf32>
    %69 = arith.truncf %68 : vector<8x16xf32> to vector<8x16xbf16>
    %c0_32 = arith.constant 0 : index
    %c0_33 = arith.constant 0 : index
    %c0_34 = arith.constant 0 : index
    %70 = vector.load %arg9[%c0_32, %c0_33, %c0_34] : memref<2x32x32xbf16, #tpu.memory_space<vmem>>, vector<1x16x32xbf16>
    %71 = vector.shape_cast %70 : vector<1x16x32xbf16> to vector<16x32xbf16>
    %cst_35 = arith.constant dense<0.000000e+00> : vector<8x32xf32>
    %72 = tpu.matmul %69, %71, %cst_35 {dimension_numbers = #tpu.dot_dimension_numbers<[1], [0], [0], [1], [0, 0, 1, 1], [], []>} : vector<8x16xbf16>, vector<16x32xbf16>, vector<8x32xf32> -> vector<8x32xf32>
    %73 = arith.addf %48, %72 : vector<8x32xf32>
    %74 = vector.extract_strided_slice %47 {offsets = [0, 16], sizes = [8, 16], strides = [1, 1]} : vector<8x96xf32> to vector<8x16xf32>
    %75 = arith.truncf %74 : vector<8x16xf32> to vector<8x16xbf16>
    %76 = vector.extract_strided_slice %47 {offsets = [0, 48], sizes = [8, 16], strides = [1, 1]} : vector<8x96xf32> to vector<8x16xf32>
    %77 = arith.truncf %76 : vector<8x16xf32> to vector<8x16xbf16>
    %78 = vector.extract_strided_slice %47 {offsets = [0, 80], sizes = [8, 16], strides = [1, 1]} : vector<8x96xf32> to vector<8x16xf32>
    %79 = arith.truncf %78 : vector<8x16xf32> to vector<8x16xbf16>
    %cst_36 = arith.constant dense<0.000000e+00> : vector<8x8xf32>
    %80 = tpu.matmul %75, %77, %cst_36 {dimension_numbers = #tpu.dot_dimension_numbers<[1], [1], [0], [0], [0, 0, 1, 0], [], []>} : vector<8x16xbf16>, vector<8x16xbf16>, vector<8x8xf32> -> vector<8x8xf32>
    %81 = vector.broadcast %13 : vector<1x8xf32> to vector<8x8xf32>
    %82 = arith.addf %80, %81 : vector<8x8xf32>
    %cst_37 = arith.constant dense<0xFF800000> : vector<8xf32>
    %83 = vector.multi_reduction <maximumf>, %82, %cst_37 [1] : vector<8x8xf32> to vector<8xf32>
    %84 = vector.shape_cast %83 : vector<8xf32> to vector<8x1xf32>
    %85 = vector.broadcast %84 : vector<8x1xf32> to vector<8x8xf32>
    %86 = arith.subf %82, %85 : vector<8x8xf32>
    %87 = math.exp %86 : vector<8x8xf32>
    %cst_38 = arith.constant dense<0.000000e+00> : vector<8xf32>
    %88 = vector.multi_reduction <add>, %87, %cst_38 [1] : vector<8x8xf32> to vector<8xf32>
    %89 = vector.shape_cast %88 : vector<8xf32> to vector<8x1xf32>
    %90 = vector.broadcast %89 : vector<8x1xf32> to vector<8x8xf32>
    %91 = arith.divf %87, %90 : vector<8x8xf32>
    %92 = arith.truncf %91 : vector<8x8xf32> to vector<8x8xbf16>
    %cst_39 = arith.constant dense<0.000000e+00> : vector<8x16xf32>
    %93 = tpu.matmul %92, %79, %cst_39 {dimension_numbers = #tpu.dot_dimension_numbers<[1], [0], [0], [1], [0, 0, 1, 1], [], []>} : vector<8x8xbf16>, vector<8x16xbf16>, vector<8x16xf32> -> vector<8x16xf32>
    %94 = arith.truncf %93 : vector<8x16xf32> to vector<8x16xbf16>
    %c0_40 = arith.constant 0 : index
    %c16 = arith.constant 16 : index
    %c0_41 = arith.constant 0 : index
    %95 = vector.load %arg9[%c0_40, %c16, %c0_41] : memref<2x32x32xbf16, #tpu.memory_space<vmem>>, vector<1x16x32xbf16>
    %96 = vector.shape_cast %95 : vector<1x16x32xbf16> to vector<16x32xbf16>
    %cst_42 = arith.constant dense<0.000000e+00> : vector<8x32xf32>
    %97 = tpu.matmul %94, %96, %cst_42 {dimension_numbers = #tpu.dot_dimension_numbers<[1], [0], [0], [1], [0, 0, 1, 1], [], []>} : vector<8x16xbf16>, vector<16x32xbf16>, vector<8x32xf32> -> vector<8x32xf32>
    %98 = arith.addf %73, %97 : vector<8x32xf32>
    %99 = arith.addf %11, %98 : vector<8x32xf32>
    %c0_43 = arith.constant 0 : index
    %c0_44 = arith.constant 0 : index
    %c0_45 = arith.constant 0 : index
    %100 = vector.load %arg10[%c0_43, %c0_44, %c0_45] : memref<2x1x32xf32, #tpu.memory_space<vmem>>, vector<1x1x32xf32>
    %101 = vector.shape_cast %100 : vector<1x1x32xf32> to vector<1x32xf32>
    %102 = vector.broadcast %101 : vector<1x32xf32> to vector<8x32xf32>
    %103 = arith.addf %99, %102 : vector<8x32xf32>
    %c0_46 = arith.constant 0 : index
    %c0_47 = arith.constant 0 : index
    %c0_48 = arith.constant 0 : index
    %104 = vector.load %arg11[%c0_46, %c0_47, %c0_48] : memref<2x1x32xf32, #tpu.memory_space<vmem>>, vector<1x1x32xf32>
    %105 = vector.shape_cast %104 : vector<1x1x32xf32> to vector<1x32xf32>
    %c0_49 = arith.constant 0 : index
    %c0_50 = arith.constant 0 : index
    %c0_51 = arith.constant 0 : index
    %106 = vector.load %arg12[%c0_49, %c0_50, %c0_51] : memref<2x1x32xf32, #tpu.memory_space<vmem>>, vector<1x1x32xf32>
    %107 = vector.shape_cast %106 : vector<1x1x32xf32> to vector<1x32xf32>
    %cst_52 = arith.constant dense<0.000000e+00> : vector<8xf32>
    %108 = vector.multi_reduction <add>, %103, %cst_52 [1] : vector<8x32xf32> to vector<8xf32>
    %109 = vector.shape_cast %108 : vector<8xf32> to vector<8x1xf32>
    %cst_53 = arith.constant 3.200000e+01 : f32
    %110 = vector.broadcast %cst_53 : f32 to vector<8x1xf32>
    %111 = arith.divf %109, %110 : vector<8x1xf32>
    %112 = vector.broadcast %111 : vector<8x1xf32> to vector<8x32xf32>
    %113 = arith.subf %103, %112 : vector<8x32xf32>
    %114 = arith.mulf %113, %113 : vector<8x32xf32>
    %cst_54 = arith.constant dense<0.000000e+00> : vector<8xf32>
    %115 = vector.multi_reduction <add>, %114, %cst_54 [1] : vector<8x32xf32> to vector<8xf32>
    %116 = vector.shape_cast %115 : vector<8xf32> to vector<8x1xf32>
    %cst_55 = arith.constant 3.200000e+01 : f32
    %117 = vector.broadcast %cst_55 : f32 to vector<8x1xf32>
    %118 = arith.divf %116, %117 : vector<8x1xf32>
    %119 = vector.broadcast %111 : vector<8x1xf32> to vector<8x32xf32>
    %120 = arith.subf %103, %119 : vector<8x32xf32>
    %cst_56 = arith.constant 9.99999974E-6 : f32
    %121 = vector.broadcast %cst_56 : f32 to vector<8x1xf32>
    %122 = arith.addf %118, %121 : vector<8x1xf32>
    %123 = math.rsqrt %122 : vector<8x1xf32>
    %124 = vector.broadcast %123 : vector<8x1xf32> to vector<8x32xf32>
    %125 = arith.mulf %120, %124 : vector<8x32xf32>
    %126 = vector.broadcast %105 : vector<1x32xf32> to vector<8x32xf32>
    %127 = arith.mulf %125, %126 : vector<8x32xf32>
    %128 = vector.broadcast %107 : vector<1x32xf32> to vector<8x32xf32>
    %129 = arith.addf %127, %128 : vector<8x32xf32>
    %130 = arith.truncf %129 : vector<8x32xf32> to vector<8x32xbf16>
    %c0_57 = arith.constant 0 : index
    %c0_58 = arith.constant 0 : index
    %c0_59 = arith.constant 0 : index
    %131 = vector.load %arg13[%c0_57, %c0_58, %c0_59] : memref<2x32x64xbf16, #tpu.memory_space<vmem>>, vector<1x32x64xbf16>
    %132 = vector.shape_cast %131 : vector<1x32x64xbf16> to vector<32x64xbf16>
    %cst_60 = arith.constant dense<0.000000e+00> : vector<8x64xf32>
    %133 = tpu.matmul %130, %132, %cst_60 {dimension_numbers = #tpu.dot_dimension_numbers<[1], [0], [0], [1], [0, 0, 1, 1], [], []>} : vector<8x32xbf16>, vector<32x64xbf16>, vector<8x64xf32> -> vector<8x64xf32>
    %c0_61 = arith.constant 0 : index
    %c0_62 = arith.constant 0 : index
    %c0_63 = arith.constant 0 : index
    %134 = vector.load %arg14[%c0_61, %c0_62, %c0_63] : memref<2x1x64xf32, #tpu.memory_space<vmem>>, vector<1x1x64xf32>
    %135 = vector.shape_cast %134 : vector<1x1x64xf32> to vector<1x64xf32>
    %136 = vector.broadcast %135 : vector<1x64xf32> to vector<8x64xf32>
    %137 = arith.addf %133, %136 : vector<8x64xf32>
    %138 = arith.mulf %137, %137 : vector<8x64xf32>
    %139 = arith.mulf %137, %138 : vector<8x64xf32>
    %cst_64 = arith.constant 4.471500e-02 : f32
    %140 = vector.broadcast %cst_64 : f32 to vector<8x64xf32>
    %141 = arith.mulf %140, %139 : vector<8x64xf32>
    %142 = arith.addf %137, %141 : vector<8x64xf32>
    %cst_65 = arith.constant 0.797884583 : f32
    %143 = vector.broadcast %cst_65 : f32 to vector<8x64xf32>
    %144 = arith.mulf %143, %142 : vector<8x64xf32>
    %145 = math.tanh %144 : vector<8x64xf32>
    %cst_66 = arith.constant 1.000000e+00 : f32
    %146 = vector.broadcast %cst_66 : f32 to vector<8x64xf32>
    %147 = arith.addf %146, %145 : vector<8x64xf32>
    %cst_67 = arith.constant 5.000000e-01 : f32
    %148 = vector.broadcast %cst_67 : f32 to vector<8x64xf32>
    %149 = arith.mulf %148, %147 : vector<8x64xf32>
    %150 = arith.mulf %137, %149 : vector<8x64xf32>
    %151 = arith.truncf %150 : vector<8x64xf32> to vector<8x64xbf16>
    %c0_68 = arith.constant 0 : index
    %c0_69 = arith.constant 0 : index
    %c0_70 = arith.constant 0 : index
    %152 = vector.load %arg15[%c0_68, %c0_69, %c0_70] : memref<2x64x32xbf16, #tpu.memory_space<vmem>>, vector<1x64x32xbf16>
    %153 = vector.shape_cast %152 : vector<1x64x32xbf16> to vector<64x32xbf16>
    %cst_71 = arith.constant dense<0.000000e+00> : vector<8x32xf32>
    %154 = tpu.matmul %151, %153, %cst_71 {dimension_numbers = #tpu.dot_dimension_numbers<[1], [0], [0], [1], [0, 0, 1, 1], [], []>} : vector<8x64xbf16>, vector<64x32xbf16>, vector<8x32xf32> -> vector<8x32xf32>
    %c0_72 = arith.constant 0 : index
    %c0_73 = arith.constant 0 : index
    %c0_74 = arith.constant 0 : index
    %155 = vector.load %arg16[%c0_72, %c0_73, %c0_74] : memref<2x1x32xf32, #tpu.memory_space<vmem>>, vector<1x1x32xf32>
    %156 = vector.shape_cast %155 : vector<1x1x32xf32> to vector<1x32xf32>
    %157 = vector.broadcast %156 : vector<1x32xf32> to vector<8x32xf32>
    %158 = arith.addf %154, %157 : vector<8x32xf32>
    %159 = arith.addf %103, %158 : vector<8x32xf32>
    %c1 = arith.constant 1 : index
    %c0_75 = arith.constant 0 : index
    %c0_76 = arith.constant 0 : index
    %160 = vector.load %arg5[%c1, %c0_75, %c0_76] : memref<2x1x32xf32, #tpu.memory_space<vmem>>, vector<1x1x32xf32>
    %161 = vector.shape_cast %160 : vector<1x1x32xf32> to vector<1x32xf32>
    %c1_77 = arith.constant 1 : index
    %c0_78 = arith.constant 0 : index
    %c0_79 = arith.constant 0 : index
    %162 = vector.load %arg6[%c1_77, %c0_78, %c0_79] : memref<2x1x32xf32, #tpu.memory_space<vmem>>, vector<1x1x32xf32>
    %163 = vector.shape_cast %162 : vector<1x1x32xf32> to vector<1x32xf32>
    %cst_80 = arith.constant dense<0.000000e+00> : vector<8xf32>
    %164 = vector.multi_reduction <add>, %159, %cst_80 [1] : vector<8x32xf32> to vector<8xf32>
    %165 = vector.shape_cast %164 : vector<8xf32> to vector<8x1xf32>
    %cst_81 = arith.constant 3.200000e+01 : f32
    %166 = vector.broadcast %cst_81 : f32 to vector<8x1xf32>
    %167 = arith.divf %165, %166 : vector<8x1xf32>
    %168 = vector.broadcast %167 : vector<8x1xf32> to vector<8x32xf32>
    %169 = arith.subf %159, %168 : vector<8x32xf32>
    %170 = arith.mulf %169, %169 : vector<8x32xf32>
    %cst_82 = arith.constant dense<0.000000e+00> : vector<8xf32>
    %171 = vector.multi_reduction <add>, %170, %cst_82 [1] : vector<8x32xf32> to vector<8xf32>
    %172 = vector.shape_cast %171 : vector<8xf32> to vector<8x1xf32>
    %cst_83 = arith.constant 3.200000e+01 : f32
    %173 = vector.broadcast %cst_83 : f32 to vector<8x1xf32>
    %174 = arith.divf %172, %173 : vector<8x1xf32>
    %175 = vector.broadcast %167 : vector<8x1xf32> to vector<8x32xf32>
    %176 = arith.subf %159, %175 : vector<8x32xf32>
    %cst_84 = arith.constant 9.99999974E-6 : f32
    %177 = vector.broadcast %cst_84 : f32 to vector<8x1xf32>
    %178 = arith.addf %174, %177 : vector<8x1xf32>
    %179 = math.rsqrt %178 : vector<8x1xf32>
    %180 = vector.broadcast %179 : vector<8x1xf32> to vector<8x32xf32>
    %181 = arith.mulf %176, %180 : vector<8x32xf32>
    %182 = vector.broadcast %161 : vector<1x32xf32> to vector<8x32xf32>
    %183 = arith.mulf %181, %182 : vector<8x32xf32>
    %184 = vector.broadcast %163 : vector<1x32xf32> to vector<8x32xf32>
    %185 = arith.addf %183, %184 : vector<8x32xf32>
    %186 = arith.truncf %185 : vector<8x32xf32> to vector<8x32xbf16>
    %c1_85 = arith.constant 1 : index
    %c0_86 = arith.constant 0 : index
    %c0_87 = arith.constant 0 : index
    %187 = vector.load %arg7[%c1_85, %c0_86, %c0_87] : memref<2x32x96xbf16, #tpu.memory_space<vmem>>, vector<1x32x96xbf16>
    %188 = vector.shape_cast %187 : vector<1x32x96xbf16> to vector<32x96xbf16>
    %cst_88 = arith.constant dense<0.000000e+00> : vector<8x96xf32>
    %189 = tpu.matmul %186, %188, %cst_88 {dimension_numbers = #tpu.dot_dimension_numbers<[1], [0], [0], [1], [0, 0, 1, 1], [], []>} : vector<8x32xbf16>, vector<32x96xbf16>, vector<8x96xf32> -> vector<8x96xf32>
    %c1_89 = arith.constant 1 : index
    %c0_90 = arith.constant 0 : index
    %c0_91 = arith.constant 0 : index
    %190 = vector.load %arg8[%c1_89, %c0_90, %c0_91] : memref<2x1x96xf32, #tpu.memory_space<vmem>>, vector<1x1x96xf32>
    %191 = vector.shape_cast %190 : vector<1x1x96xf32> to vector<1x96xf32>
    %192 = vector.broadcast %191 : vector<1x96xf32> to vector<8x96xf32>
    %193 = arith.addf %189, %192 : vector<8x96xf32>
    %cst_92 = arith.constant 0.000000e+00 : f32
    %194 = vector.broadcast %cst_92 : f32 to vector<8x32xf32>
    %195 = vector.extract_strided_slice %193 {offsets = [0, 0], sizes = [8, 16], strides = [1, 1]} : vector<8x96xf32> to vector<8x16xf32>
    %196 = arith.truncf %195 : vector<8x16xf32> to vector<8x16xbf16>
    %197 = vector.extract_strided_slice %193 {offsets = [0, 32], sizes = [8, 16], strides = [1, 1]} : vector<8x96xf32> to vector<8x16xf32>
    %198 = arith.truncf %197 : vector<8x16xf32> to vector<8x16xbf16>
    %199 = vector.extract_strided_slice %193 {offsets = [0, 64], sizes = [8, 16], strides = [1, 1]} : vector<8x96xf32> to vector<8x16xf32>
    %200 = arith.truncf %199 : vector<8x16xf32> to vector<8x16xbf16>
    %cst_93 = arith.constant dense<0.000000e+00> : vector<8x8xf32>
    %201 = tpu.matmul %196, %198, %cst_93 {dimension_numbers = #tpu.dot_dimension_numbers<[1], [1], [0], [0], [0, 0, 1, 0], [], []>} : vector<8x16xbf16>, vector<8x16xbf16>, vector<8x8xf32> -> vector<8x8xf32>
    %202 = vector.broadcast %13 : vector<1x8xf32> to vector<8x8xf32>
    %203 = arith.addf %201, %202 : vector<8x8xf32>
    %cst_94 = arith.constant dense<0xFF800000> : vector<8xf32>
    %204 = vector.multi_reduction <maximumf>, %203, %cst_94 [1] : vector<8x8xf32> to vector<8xf32>
    %205 = vector.shape_cast %204 : vector<8xf32> to vector<8x1xf32>
    %206 = vector.broadcast %205 : vector<8x1xf32> to vector<8x8xf32>
    %207 = arith.subf %203, %206 : vector<8x8xf32>
    %208 = math.exp %207 : vector<8x8xf32>
    %cst_95 = arith.constant dense<0.000000e+00> : vector<8xf32>
    %209 = vector.multi_reduction <add>, %208, %cst_95 [1] : vector<8x8xf32> to vector<8xf32>
    %210 = vector.shape_cast %209 : vector<8xf32> to vector<8x1xf32>
    %211 = vector.broadcast %210 : vector<8x1xf32> to vector<8x8xf32>
    %212 = arith.divf %208, %211 : vector<8x8xf32>
    %213 = arith.truncf %212 : vector<8x8xf32> to vector<8x8xbf16>
    %cst_96 = arith.constant dense<0.000000e+00> : vector<8x16xf32>
    %214 = tpu.matmul %213, %200, %cst_96 {dimension_numbers = #tpu.dot_dimension_numbers<[1], [0], [0], [1], [0, 0, 1, 1], [], []>} : vector<8x8xbf16>, vector<8x16xbf16>, vector<8x16xf32> -> vector<8x16xf32>
    %215 = arith.truncf %214 : vector<8x16xf32> to vector<8x16xbf16>
    %c1_97 = arith.constant 1 : index
    %c0_98 = arith.constant 0 : index
    %c0_99 = arith.constant 0 : index
    %216 = vector.load %arg9[%c1_97, %c0_98, %c0_99] : memref<2x32x32xbf16, #tpu.memory_space<vmem>>, vector<1x16x32xbf16>
    %217 = vector.shape_cast %216 : vector<1x16x32xbf16> to vector<16x32xbf16>
    %cst_100 = arith.constant dense<0.000000e+00> : vector<8x32xf32>
    %218 = tpu.matmul %215, %217, %cst_100 {dimension_numbers = #tpu.dot_dimension_numbers<[1], [0], [0], [1], [0, 0, 1, 1], [], []>} : vector<8x16xbf16>, vector<16x32xbf16>, vector<8x32xf32> -> vector<8x32xf32>
    %219 = arith.addf %194, %218 : vector<8x32xf32>
    %220 = vector.extract_strided_slice %193 {offsets = [0, 16], sizes = [8, 16], strides = [1, 1]} : vector<8x96xf32> to vector<8x16xf32>
    %221 = arith.truncf %220 : vector<8x16xf32> to vector<8x16xbf16>
    %222 = vector.extract_strided_slice %193 {offsets = [0, 48], sizes = [8, 16], strides = [1, 1]} : vector<8x96xf32> to vector<8x16xf32>
    %223 = arith.truncf %222 : vector<8x16xf32> to vector<8x16xbf16>
    %224 = vector.extract_strided_slice %193 {offsets = [0, 80], sizes = [8, 16], strides = [1, 1]} : vector<8x96xf32> to vector<8x16xf32>
    %225 = arith.truncf %224 : vector<8x16xf32> to vector<8x16xbf16>
    %cst_101 = arith.constant dense<0.000000e+00> : vector<8x8xf32>
    %226 = tpu.matmul %221, %223, %cst_101 {dimension_numbers = #tpu.dot_dimension_numbers<[1], [1], [0], [0], [0, 0, 1, 0], [], []>} : vector<8x16xbf16>, vector<8x16xbf16>, vector<8x8xf32> -> vector<8x8xf32>
    %227 = vector.broadcast %13 : vector<1x8xf32> to vector<8x8xf32>
    %228 = arith.addf %226, %227 : vector<8x8xf32>
    %cst_102 = arith.constant dense<0xFF800000> : vector<8xf32>
    %229 = vector.multi_reduction <maximumf>, %228, %cst_102 [1] : vector<8x8xf32> to vector<8xf32>
    %230 = vector.shape_cast %229 : vector<8xf32> to vector<8x1xf32>
    %231 = vector.broadcast %230 : vector<8x1xf32> to vector<8x8xf32>
    %232 = arith.subf %228, %231 : vector<8x8xf32>
    %233 = math.exp %232 : vector<8x8xf32>
    %cst_103 = arith.constant dense<0.000000e+00> : vector<8xf32>
    %234 = vector.multi_reduction <add>, %233, %cst_103 [1] : vector<8x8xf32> to vector<8xf32>
    %235 = vector.shape_cast %234 : vector<8xf32> to vector<8x1xf32>
    %236 = vector.broadcast %235 : vector<8x1xf32> to vector<8x8xf32>
    %237 = arith.divf %233, %236 : vector<8x8xf32>
    %238 = arith.truncf %237 : vector<8x8xf32> to vector<8x8xbf16>
    %cst_104 = arith.constant dense<0.000000e+00> : vector<8x16xf32>
    %239 = tpu.matmul %238, %225, %cst_104 {dimension_numbers = #tpu.dot_dimension_numbers<[1], [0], [0], [1], [0, 0, 1, 1], [], []>} : vector<8x8xbf16>, vector<8x16xbf16>, vector<8x16xf32> -> vector<8x16xf32>
    %240 = arith.truncf %239 : vector<8x16xf32> to vector<8x16xbf16>
    %c1_105 = arith.constant 1 : index
    %c16_106 = arith.constant 16 : index
    %c0_107 = arith.constant 0 : index
    %241 = vector.load %arg9[%c1_105, %c16_106, %c0_107] : memref<2x32x32xbf16, #tpu.memory_space<vmem>>, vector<1x16x32xbf16>
    %242 = vector.shape_cast %241 : vector<1x16x32xbf16> to vector<16x32xbf16>
    %cst_108 = arith.constant dense<0.000000e+00> : vector<8x32xf32>
    %243 = tpu.matmul %240, %242, %cst_108 {dimension_numbers = #tpu.dot_dimension_numbers<[1], [0], [0], [1], [0, 0, 1, 1], [], []>} : vector<8x16xbf16>, vector<16x32xbf16>, vector<8x32xf32> -> vector<8x32xf32>
    %244 = arith.addf %219, %243 : vector<8x32xf32>
    %245 = arith.addf %159, %244 : vector<8x32xf32>
    %c1_109 = arith.constant 1 : index
    %c0_110 = arith.constant 0 : index
    %c0_111 = arith.constant 0 : index
    %246 = vector.load %arg10[%c1_109, %c0_110, %c0_111] : memref<2x1x32xf32, #tpu.memory_space<vmem>>, vector<1x1x32xf32>
    %247 = vector.shape_cast %246 : vector<1x1x32xf32> to vector<1x32xf32>
    %248 = vector.broadcast %247 : vector<1x32xf32> to vector<8x32xf32>
    %249 = arith.addf %245, %248 : vector<8x32xf32>
    %c1_112 = arith.constant 1 : index
    %c0_113 = arith.constant 0 : index
    %c0_114 = arith.constant 0 : index
    %250 = vector.load %arg11[%c1_112, %c0_113, %c0_114] : memref<2x1x32xf32, #tpu.memory_space<vmem>>, vector<1x1x32xf32>
    %251 = vector.shape_cast %250 : vector<1x1x32xf32> to vector<1x32xf32>
    %c1_115 = arith.constant 1 : index
    %c0_116 = arith.constant 0 : index
    %c0_117 = arith.constant 0 : index
    %252 = vector.load %arg12[%c1_115, %c0_116, %c0_117] : memref<2x1x32xf32, #tpu.memory_space<vmem>>, vector<1x1x32xf32>
    %253 = vector.shape_cast %252 : vector<1x1x32xf32> to vector<1x32xf32>
    %cst_118 = arith.constant dense<0.000000e+00> : vector<8xf32>
    %254 = vector.multi_reduction <add>, %249, %cst_118 [1] : vector<8x32xf32> to vector<8xf32>
    %255 = vector.shape_cast %254 : vector<8xf32> to vector<8x1xf32>
    %cst_119 = arith.constant 3.200000e+01 : f32
    %256 = vector.broadcast %cst_119 : f32 to vector<8x1xf32>
    %257 = arith.divf %255, %256 : vector<8x1xf32>
    %258 = vector.broadcast %257 : vector<8x1xf32> to vector<8x32xf32>
    %259 = arith.subf %249, %258 : vector<8x32xf32>
    %260 = arith.mulf %259, %259 : vector<8x32xf32>
    %cst_120 = arith.constant dense<0.000000e+00> : vector<8xf32>
    %261 = vector.multi_reduction <add>, %260, %cst_120 [1] : vector<8x32xf32> to vector<8xf32>
    %262 = vector.shape_cast %261 : vector<8xf32> to vector<8x1xf32>
    %cst_121 = arith.constant 3.200000e+01 : f32
    %263 = vector.broadcast %cst_121 : f32 to vector<8x1xf32>
    %264 = arith.divf %262, %263 : vector<8x1xf32>
    %265 = vector.broadcast %257 : vector<8x1xf32> to vector<8x32xf32>
    %266 = arith.subf %249, %265 : vector<8x32xf32>
    %cst_122 = arith.constant 9.99999974E-6 : f32
    %267 = vector.broadcast %cst_122 : f32 to vector<8x1xf32>
    %268 = arith.addf %264, %267 : vector<8x1xf32>
    %269 = math.rsqrt %268 : vector<8x1xf32>
    %270 = vector.broadcast %269 : vector<8x1xf32> to vector<8x32xf32>
    %271 = arith.mulf %266, %270 : vector<8x32xf32>
    %272 = vector.broadcast %251 : vector<1x32xf32> to vector<8x32xf32>
    %273 = arith.mulf %271, %272 : vector<8x32xf32>
    %274 = vector.broadcast %253 : vector<1x32xf32> to vector<8x32xf32>
    %275 = arith.addf %273, %274 : vector<8x32xf32>
    %276 = arith.truncf %275 : vector<8x32xf32> to vector<8x32xbf16>
    %c1_123 = arith.constant 1 : index
    %c0_124 = arith.constant 0 : index
    %c0_125 = arith.constant 0 : index
    %277 = vector.load %arg13[%c1_123, %c0_124, %c0_125] : memref<2x32x64xbf16, #tpu.memory_space<vmem>>, vector<1x32x64xbf16>
    %278 = vector.shape_cast %277 : vector<1x32x64xbf16> to vector<32x64xbf16>
    %cst_126 = arith.constant dense<0.000000e+00> : vector<8x64xf32>
    %279 = tpu.matmul %276, %278, %cst_126 {dimension_numbers = #tpu.dot_dimension_numbers<[1], [0], [0], [1], [0, 0, 1, 1], [], []>} : vector<8x32xbf16>, vector<32x64xbf16>, vector<8x64xf32> -> vector<8x64xf32>
    %c1_127 = arith.constant 1 : index
    %c0_128 = arith.constant 0 : index
    %c0_129 = arith.constant 0 : index
    %280 = vector.load %arg14[%c1_127, %c0_128, %c0_129] : memref<2x1x64xf32, #tpu.memory_space<vmem>>, vector<1x1x64xf32>
    %281 = vector.shape_cast %280 : vector<1x1x64xf32> to vector<1x64xf32>
    %282 = vector.broadcast %281 : vector<1x64xf32> to vector<8x64xf32>
    %283 = arith.addf %279, %282 : vector<8x64xf32>
    %284 = arith.mulf %283, %283 : vector<8x64xf32>
    %285 = arith.mulf %283, %284 : vector<8x64xf32>
    %cst_130 = arith.constant 4.471500e-02 : f32
    %286 = vector.broadcast %cst_130 : f32 to vector<8x64xf32>
    %287 = arith.mulf %286, %285 : vector<8x64xf32>
    %288 = arith.addf %283, %287 : vector<8x64xf32>
    %cst_131 = arith.constant 0.797884583 : f32
    %289 = vector.broadcast %cst_131 : f32 to vector<8x64xf32>
    %290 = arith.mulf %289, %288 : vector<8x64xf32>
    %291 = math.tanh %290 : vector<8x64xf32>
    %cst_132 = arith.constant 1.000000e+00 : f32
    %292 = vector.broadcast %cst_132 : f32 to vector<8x64xf32>
    %293 = arith.addf %292, %291 : vector<8x64xf32>
    %cst_133 = arith.constant 5.000000e-01 : f32
    %294 = vector.broadcast %cst_133 : f32 to vector<8x64xf32>
    %295 = arith.mulf %294, %293 : vector<8x64xf32>
    %296 = arith.mulf %283, %295 : vector<8x64xf32>
    %297 = arith.truncf %296 : vector<8x64xf32> to vector<8x64xbf16>
    %c1_134 = arith.constant 1 : index
    %c0_135 = arith.constant 0 : index
    %c0_136 = arith.constant 0 : index
    %298 = vector.load %arg15[%c1_134, %c0_135, %c0_136] : memref<2x64x32xbf16, #tpu.memory_space<vmem>>, vector<1x64x32xbf16>
    %299 = vector.shape_cast %298 : vector<1x64x32xbf16> to vector<64x32xbf16>
    %cst_137 = arith.constant dense<0.000000e+00> : vector<8x32xf32>
    %300 = tpu.matmul %297, %299, %cst_137 {dimension_numbers = #tpu.dot_dimension_numbers<[1], [0], [0], [1], [0, 0, 1, 1], [], []>} : vector<8x64xbf16>, vector<64x32xbf16>, vector<8x32xf32> -> vector<8x32xf32>
    %c1_138 = arith.constant 1 : index
    %c0_139 = arith.constant 0 : index
    %c0_140 = arith.constant 0 : index
    %301 = vector.load %arg16[%c1_138, %c0_139, %c0_140] : memref<2x1x32xf32, #tpu.memory_space<vmem>>, vector<1x1x32xf32>
    %302 = vector.shape_cast %301 : vector<1x1x32xf32> to vector<1x32xf32>
    %303 = vector.broadcast %302 : vector<1x32xf32> to vector<8x32xf32>
    %304 = arith.addf %300, %303 : vector<8x32xf32>
    %305 = arith.addf %249, %304 : vector<8x32xf32>
    %c0_141 = arith.constant 0 : index
    %c0_142 = arith.constant 0 : index
    %306 = vector.load %arg17[%c0_141, %c0_142] : memref<1x32xf32, #tpu.memory_space<vmem>>, vector<1x32xf32>
    %c0_143 = arith.constant 0 : index
    %c0_144 = arith.constant 0 : index
    %307 = vector.load %arg18[%c0_143, %c0_144] : memref<1x32xf32, #tpu.memory_space<vmem>>, vector<1x32xf32>
    %cst_145 = arith.constant dense<0.000000e+00> : vector<8xf32>
    %308 = vector.multi_reduction <add>, %305, %cst_145 [1] : vector<8x32xf32> to vector<8xf32>
    %309 = vector.shape_cast %308 : vector<8xf32> to vector<8x1xf32>
    %cst_146 = arith.constant 3.200000e+01 : f32
    %310 = vector.broadcast %cst_146 : f32 to vector<8x1xf32>
    %311 = arith.divf %309, %310 : vector<8x1xf32>
    %312 = vector.broadcast %311 : vector<8x1xf32> to vector<8x32xf32>
    %313 = arith.subf %305, %312 : vector<8x32xf32>
    %314 = arith.mulf %313, %313 : vector<8x32xf32>
    %cst_147 = arith.constant dense<0.000000e+00> : vector<8xf32>
    %315 = vector.multi_reduction <add>, %314, %cst_147 [1] : vector<8x32xf32> to vector<8xf32>
    %316 = vector.shape_cast %315 : vector<8xf32> to vector<8x1xf32>
    %cst_148 = arith.constant 3.200000e+01 : f32
    %317 = vector.broadcast %cst_148 : f32 to vector<8x1xf32>
    %318 = arith.divf %316, %317 : vector<8x1xf32>
    %319 = vector.broadcast %311 : vector<8x1xf32> to vector<8x32xf32>
    %320 = arith.subf %305, %319 : vector<8x32xf32>
    %cst_149 = arith.constant 9.99999974E-6 : f32
    %321 = vector.broadcast %cst_149 : f32 to vector<8x1xf32>
    %322 = arith.addf %318, %321 : vector<8x1xf32>
    %323 = math.rsqrt %322 : vector<8x1xf32>
    %324 = vector.broadcast %323 : vector<8x1xf32> to vector<8x32xf32>
    %325 = arith.mulf %320, %324 : vector<8x32xf32>
    %326 = vector.broadcast %306 : vector<1x32xf32> to vector<8x32xf32>
    %327 = arith.mulf %325, %326 : vector<8x32xf32>
    %328 = vector.broadcast %307 : vector<1x32xf32> to vector<8x32xf32>
    %329 = arith.addf %327, %328 : vector<8x32xf32>
    %c0_150 = arith.constant 0 : index
    %c0_151 = arith.constant 0 : index
    %c0_152 = arith.constant 0 : index
    %330 = vector.load %arg19[%c0_150, %c0_151, %c0_152] : memref<1x8x32xf32, #tpu.memory_space<vmem>>, vector<1x8x32xf32>
    %331 = vector.shape_cast %330 : vector<1x8x32xf32> to vector<8x32xf32>
    %332 = vector.shape_cast %329 : vector<8x32xf32> to vector<1x8x32xf32>
    tpu.vector_store %arg19[%c0_150, %c0_151, %c0_152], %332 {strides = array<i32>} : memref<1x8x32xf32, #tpu.memory_space<vmem>>, vector<1x8x32xf32>,
    return
  }
  func.func @transform_0(%arg0: i32) -> (i32, i32, i32) {
    %c0_i32 = arith.constant 0 : i32
    %c0_i32_0 = arith.constant 0 : i32
    %c0_i32_1 = arith.constant 0 : i32
    return %arg0, %c0_i32, %c0_i32_0 : i32, i32, i32
  }
  func.func @transform_1(%arg0: i32) -> (i32, i32, i32) {
    %c0_i32 = arith.constant 0 : i32
    %c0_i32_0 = arith.constant 0 : i32
    %c0_i32_1 = arith.constant 0 : i32
    return %arg0, %c0_i32, %c0_i32_0 : i32, i32, i32
  }
  func.func @transform_2(%arg0: i32) -> (i32, i32) {
    %c0_i32 = arith.constant 0 : i32
    %c0_i32_0 = arith.constant 0 : i32
    %c0_i32_1 = arith.constant 0 : i32
    return %c0_i32, %c0_i32_0 : i32, i32
  }
  func.func @transform_3(%arg0: i32) -> (i32, i32) {
    %c0_i32 = arith.constant 0 : i32
    %c0_i32_0 = arith.constant 0 : i32
    %c0_i32_1 = arith.constant 0 : i32
    return %c0_i32, %c0_i32_0 : i32, i32
  }
  func.func @transform_4(%arg0: i32) -> (i32, i32, i32) {
    %c0_i32 = arith.constant 0 : i32
    %c0_i32_0 = arith.constant 0 : i32
    %c0_i32_1 = arith.constant 0 : i32
    %c0_i32_2 = arith.constant 0 : i32
    return %c0_i32, %c0_i32_0, %c0_i32_1 : i32, i32, i32
  }
  func.func @transform_5(%arg0: i32) -> (i32, i32, i32) {
    %c0_i32 = arith.constant 0 : i32
    %c0_i32_0 = arith.constant 0 : i32
    %c0_i32_1 = arith.constant 0 : i32
    %c0_i32_2 = arith.constant 0 : i32
    return %c0_i32, %c0_i32_0, %c0_i32_1 : i32, i32, i32
  }
  func.func @transform_6(%arg0: i32) -> (i32, i32, i32) {
    %c0_i32 = arith.constant 0 : i32
    %c0_i32_0 = arith.constant 0 : i32
    %c0_i32_1 = arith.constant 0 : i32
    %c0_i32_2 = arith.constant 0 : i32
    return %c0_i32, %c0_i32_0, %c0_i32_1 : i32, i32, i32
  }
  func.func @transform_7(%arg0: i32) -> (i32, i32, i32) {
    %c0_i32 = arith.constant 0 : i32
    %c0_i32_0 = arith.constant 0 : i32
    %c0_i32_1 = arith.constant 0 : i32
    %c0_i32_2 = arith.constant 0 : i32
    return %c0_i32, %c0_i32_0, %c0_i32_1 : i32, i32, i32
  }
  func.func @transform_8(%arg0: i32) -> (i32, i32, i32) {
    %c0_i32 = arith.constant 0 : i32
    %c0_i32_0 = arith.constant 0 : i32
    %c0_i32_1 = arith.constant 0 : i32
    %c0_i32_2 = arith.constant 0 : i32
    return %c0_i32, %c0_i32_0, %c0_i32_1 : i32, i32, i32
  }
  func.func @transform_9(%arg0: i32) -> (i32, i32, i32) {
    %c0_i32 = arith.constant 0 : i32
    %c0_i32_0 = arith.constant 0 : i32
    %c0_i32_1 = arith.constant 0 : i32
    %c0_i32_2 = arith.constant 0 : i32
    return %c0_i32, %c0_i32_0, %c0_i32_1 : i32, i32, i32
  }
  func.func @transform_10(%arg0: i32) -> (i32, i32, i32) {
    %c0_i32 = arith.constant 0 : i32
    %c0_i32_0 = arith.constant 0 : i32
    %c0_i32_1 = arith.constant 0 : i32
    %c0_i32_2 = arith.constant 0 : i32
    return %c0_i32, %c0_i32_0, %c0_i32_1 : i32, i32, i32
  }
  func.func @transform_11(%arg0: i32) -> (i32, i32, i32) {
    %c0_i32 = arith.constant 0 : i32
    %c0_i32_0 = arith.constant 0 : i32
    %c0_i32_1 = arith.constant 0 : i32
    %c0_i32_2 = arith.constant 0 : i32
    return %c0_i32, %c0_i32_0, %c0_i32_1 : i32, i32, i32
  }
  func.func @transform_12(%arg0: i32) -> (i32, i32, i32) {
    %c0_i32 = arith.constant 0 : i32
    %c0_i32_0 = arith.constant 0 : i32
    %c0_i32_1 = arith.constant 0 : i32
    %c0_i32_2 = arith.constant 0 : i32
    return %c0_i32, %c0_i32_0, %c0_i32_1 : i32, i32, i32
  }
  func.func @transform_13(%arg0: i32) -> (i32, i32, i32) {
    %c0_i32 = arith.constant 0 : i32
    %c0_i32_0 = arith.constant 0 : i32
    %c0_i32_1 = arith.constant 0 : i32
    %c0_i32_2 = arith.constant 0 : i32
    return %c0_i32, %c0_i32_0, %c0_i32_1 : i32, i32, i32
  }
  func.func @transform_14(%arg0: i32) -> (i32, i32, i32) {
    %c0_i32 = arith.constant 0 : i32
    %c0_i32_0 = arith.constant 0 : i32
    %c0_i32_1 = arith.constant 0 : i32
    %c0_i32_2 = arith.constant 0 : i32
    return %c0_i32, %c0_i32_0, %c0_i32_1 : i32, i32, i32
  }
  func.func @transform_15(%arg0: i32) -> (i32, i32, i32) {
    %c0_i32 = arith.constant 0 : i32
    %c0_i32_0 = arith.constant 0 : i32
    %c0_i32_1 = arith.constant 0 : i32
    %c0_i32_2 = arith.constant 0 : i32
    return %c0_i32, %c0_i32_0, %c0_i32_1 : i32, i32, i32
  }
  func.func @transform_16(%arg0: i32) -> (i32, i32) {
    %c0_i32 = arith.constant 0 : i32
    %c0_i32_0 = arith.constant 0 : i32
    %c0_i32_1 = arith.constant 0 : i32
    return %c0_i32, %c0_i32_0 : i32, i32
  }
  func.func @transform_17(%arg0: i32) -> (i32, i32) {
    %c0_i32 = arith.constant 0 : i32
    %c0_i32_0 = arith.constant 0 : i32
    %c0_i32_1 = arith.constant 0 : i32
    return %c0_i32, %c0_i32_0 : i32, i32
  }
  func.func @transform_18(%arg0: i32) -> (i32, i32, i32) {
    %c0_i32 = arith.constant 0 : i32
    %c0_i32_0 = arith.constant 0 : i32
    %c0_i32_1 = arith.constant 0 : i32
    return %arg0, %c0_i32, %c0_i32_0 : i32, i32, i32
  }
}

</mosaic_0001>

<bundles_post_ra>
// kernel: tpu_custom_call.1
= control target key start
LH: loop header
LB: loop body
LE: loop exit
PB: predicated region body
PF: predicated region fallthrough
CT: control target
= control target key end

     0   :  { %s3542_s0 = inlined_call_operand.vmem [shape: s32[2,8,1], index: 0, kind: input, shape index: {}]   ;;  %s3543_s1 = inlined_call_operand.vmem [shape: f32[2,1,8], index: 1, kind: input, shape index: {}]   ;;  %s3544_s2 = inlined_call_operand.vmem [shape: f32[8,32], index: 2, kind: input, shape index: {}]   ;;  %s3545_s3 = inlined_call_operand.hbm [shape: bf16[32,32], index: 3, kind: input, shape index: {}]   ;;  %s3546_s4 = inlined_call_operand.hbm [shape: f32[2,1,32], index: 4, kind: input, shape index: {}]   ;;  %s3547_s5 = inlined_call_operand.hbm [shape: f32[2,1,32], index: 5, kind: input, shape index: {}]   ;;  %s3548_s6 = inlined_call_operand.vmem [shape: bf16[2,32,96], index: 6, kind: input, shape index: {}]   ;;  %s3549_s7 = inlined_call_operand.hbm [shape: f32[2,1,96], index: 7, kind: input, shape index: {}]   ;;  %s3550_s8 = inlined_call_operand.vmem [shape: bf16[2,32,32], index: 8, kind: input, shape index: {}]   ;;  %s3551_s9 = inlined_call_operand.hbm [shape: f32[2,1,32], index: 9, kind: input, shape index: {}]   ;;  %s3552_s10 = inlined_call_operand.hbm [shape: f32[2,1,32], index: 10, kind: input, shape index: {}]   ;;  %s3553_s11 = inlined_call_operand.hbm [shape: f32[2,1,32], index: 11, kind: input, shape index: {}]   ;;  %s3554_s12 = inlined_call_operand.vmem [shape: bf16[2,32,64], index: 12, kind: input, shape index: {}]   ;;  %s3555_s13 = inlined_call_operand.hbm [shape: f32[2,1,64], index: 13, kind: input, shape index: {}]   ;;  %s3556_s14 = inlined_call_operand.vmem [shape: bf16[2,64,32], index: 14, kind: input, shape index: {}]   ;;  %s3557_s15 = inlined_call_operand.vmem [shape: f32[2,1,32], index: 15, kind: input, shape index: {}]   ;;  %s3558_s16 = inlined_call_operand.vmem [shape: f32[1,32], index: 16, kind: input, shape index: {}]   ;;  %s3559_s17 = inlined_call_operand.vmem [shape: f32[1,32], index: 17, kind: input, shape index: {}]   ;;  %s3560_s18 = inlined_call_operand.hbm [shape: f32[2,8,32], index: 18, kind: output, shape index: {}]  }
   0x1   :  { %3573 = sst [smem:[#allocation29_spill]] %s3542_s0 }
   0x2   :  { %3574 = sst [smem:[#allocation30_spill]] %s3543_s1 }
   0x3   :  { %3575 = sst [smem:[#allocation31_spill]] %s3544_s2 }
   0x4   :  { %3576 = sst [smem:[#allocation32_spill]] %s3546_s4 }
   0x5   :  { %3577 = sst [smem:[#allocation33_spill]] %s3560_s18 }
   0x6   :  { %23 = vsyncpa [#allocation3], 0 }
   0x7   :  { %24 = vsyncpa [#allocation6], 0 }
   0x8   :  { %25 = vsyncpa [#allocation9], 0 }
   0x9   :  { %26 = vsyncpa [#allocation12], 0 }
   0xa   :  { %27 = vsyncpa [#allocation15], 0 }
   0xb   :  { %28 = vsyncpa [#allocation4], 0 }
   0xc   :  { %30 = vsyncpa [#allocation4 + $0x1], 0  ;;  %s3109_s27 = smov 0   ;;  %s3111_s28 = smov 0  }
   0xd   :  { %s3113_s29 = smov 0   ;;  %s3115_s30 = smov 0  }
   0xe LB: > { %3578 = sst [smem:[#allocation23_spill]] %s2979_s27  ;;  %s3130_s0 = sadd.s32 4294967295, %s2991_s30   ;;  %s2991_s30 = sphi %s3115_s30, %s3610_s30   ;;  %s2987_s29 = sphi %s3113_s29, %s3612_s29   ;;  %s2983_s28 = sphi %s3111_s28, %s3614_s28   ;;  %s2979_s27 = sphi %s3109_s27, %s3613_s27  }
   0xf   : > { %3579 = sst [smem:[#allocation24_spill]] %s2987_s29  ;;  %s2225_s19 = sadd.s32 4294967294, %s2991_s30  }
  0x10   : > { %3580 = sst [smem:[#allocation25_spill]] %s2991_s30  ;;  %s3134_s1 = sadd.s32 1, %s2991_s30  }
  0x11   : > { %3581 = sst [smem:[#allocation26_spill]] %s3134_s1  ;;  %s431_s20 = sadd.s32 1, %s2987_s29 }
  0x12   : > { %s428_s21 = ssub.s32 %s2991_s30, %s3134_s1  ;;  %p441_p0 = scmp.ne.s32.totalorder %s2987_s29, %s2983_s28 }
  0x13   : > { %p429_p1 = scmp.eq.s32.totalorder %s428_s21, 0  ;;  %p442_p2 = scmp.eq.s32.totalorder %s3130_s0, 1 }
  0x14   : > { %p447_p3 = scmp.ne.s32.totalorder %s2983_s28, %s2979_s27  ;;  %p448_p4 = scmp.eq.s32.totalorder %s2225_s19, 1 }
  0x15   : > { %s3145_s22 = scalar_select %p429_p1, %s2987_s29, %s431_s20  }
  0x16   : > { %p3147_p5 = por %p442_p2, %p441_p0  ;;  %p3151_p6 = por %p448_p4, %p447_p3 }
  0x17   : > { %3582 = sst [smem:[#allocation27_spill]] %s3145_s22  ;;  %p2226_p7 = scmp.ge.s32.totalorder %s2991_s30, 1 }
  0x18   : > { %s3584_s23 = scalar_select %p3151_p6, 1, 0 }
  0x19   : > { %p455_p8 = scmp.lt.s32.totalorder %s2991_s30, 3  ;;  %p3568_p9 = scmp.eq.s32.totalorder %s3130_s0, 0 }
  0x1a   : > { %3585 = sst [smem:[#allocation28_spill]] %s3584_s23  ;;  %s2993_s25 = smov [#allocation5]  }
  0x1b   : > { %p3158_p10 = pnand %p2226_p7, %p455_p8  ;;  %s483_s26 = sshll.u32 %s2993_s25, 4  ;;  %s484_s26 = int_to_ptr.vmem [resolvable:$true] %s483_s26 }
  0x1c   : > { %s2994_s20 = smov [#allocation8]   ;;  %s2995_s22 = smov [#allocation11]  }
  0x1d   : > { %p2552_p11 = pneg %p3158_p10  ;;  %s512_s21 = sshll.u32 %s2994_s20, 4  ;;  %s513_s21 = int_to_ptr.vmem [resolvable:$true] %s512_s21 }
  0x1e   : > { %s541_s29 = sshll.u32 %s2995_s22, 4  ;;  %s2714_s25 = scalar_lea.vmem %s484_s26, 32  ;;  %s542_s29 = int_to_ptr.vmem [resolvable:$true] %s541_s29 }
  0x1f   : > { %p3166_p12 = pnand %p3568_p9, %p2552_p11  ;;  %p2715_p0 = scmp.ne.s32.totalorder %s484_s26, %s2714_s25 }
  0x20   : > { %p2722_p3 = scmp.lt.s32.totalorder %s484_s26, %s484_s26  ;;  %p2723_p4 = scmp.lt.s32.totalorder %s2714_s25, %s2714_s25 }
  0x21   : > { %p3172_p13 = pneg %p3166_p12 }
  0x22   : > { %p2724_p7 = por %p2723_p4, %p2722_p3 }
  0x23   : > { %p2717_p1 = pnand %p2715_p0, %p3172_p13 }
  0x25   : > { %p2718_p2 = pneg %p2717_p1 }
  0x27   : > { %p2725_p8 = pnand %p2724_p7, %p2718_p2 }
  0x29   : > { %2728 = shalt.err (!%p2725_p8)
}
  0x2a   : > { %s3569_s20 = smov 16   ;;  %s3571_s22 = smov 1  }
  0x2b   : > { %s3589_s4 = sld [smem:[#allocation32_spill]]  ;;  %s2740_s30 = scalar_lea.vmem %s513_s21, 32 }
  0x2c   : > { %p2741_p11 = scmp.ne.s32.totalorder %s513_s21, %s2740_s30  ;;  %p2748_p3 = scmp.lt.s32.totalorder %s513_s21, %s513_s21 }
  0x2d   : > { %p2749_p2 = scmp.lt.s32.totalorder %s2740_s30, %s2740_s30 }
  0x2e   : > { %p2743_p0 = pnand %p2741_p11, %p3172_p13 }
  0x2f   : > { %p2750_p4 = por %p2749_p2, %p2748_p3 }
  0x30   : > { %p2744_p1 = pneg %p2743_p0 }
  0x31   : > { %2558 = dma.hbm_to_vmem [thread:$0]  (!%p3166_p12), %s3589_s4, 32, %s484_s26, [#allocation6], %s3569_s20, %s3569_s20, %s3571_s22  }
  0x32   : > { %p2751_p7 = pnand %p2750_p4, %p2744_p1 }
  0x34   : > { %2754 = shalt.err (!%p2751_p7)
}
  0x35   : > { %2564 = dma.hbm_to_vmem [thread:$0]  (!%p3166_p12), %s3549_s7, 32, %s513_s21, [#allocation9], %s3569_s20, %s3569_s20, %s3571_s22  }
  0x36   : > { %s2766_s27 = scalar_lea.vmem %s542_s29, 32  ;;  %p2774_p9 = scmp.lt.s32.totalorder %s542_s29, %s542_s29 }
  0x37   : > { %p2767_p8 = scmp.ne.s32.totalorder %s542_s29, %s2766_s27  ;;  %p2775_p3 = scmp.lt.s32.totalorder %s2766_s27, %s2766_s27 }
  0x39   : > { %p2769_p11 = pnand %p2767_p8, %p3172_p13  ;;  %p2776_p1 = por %p2775_p3, %p2774_p9 }
  0x3b   : > { %p2770_p0 = pneg %p2769_p11 }
  0x3d   : > { %p2777_p2 = pnand %p2776_p1, %p2770_p0 }
  0x3f   : > { %2780 = shalt.err (!%p2777_p2)
}
  0x40   : > { %2570 = dma.hbm_to_vmem [thread:$0]  (!%p3166_p12), %s3552_s10, 32, %s542_s29, [#allocation12], %s3569_s20, %s3569_s20, %s3571_s22  }
  0x41   : > { %s2998_s23 = smov [#allocation2]  }
  0x42   : > { %s470_s26 = sshll.u32 %s2998_s23, 4  ;;  %s471_s26 = int_to_ptr.vmem [resolvable:$true] %s470_s26 }
  0x43   : > { %s2792_s21 = scalar_lea.vmem %s471_s26, 256  ;;  %p2800_p8 = scmp.lt.s32.totalorder %s471_s26, %s471_s26 }
  0x44   : > { %p2793_p4 = scmp.ne.s32.totalorder %s471_s26, %s2792_s21  ;;  %p2801_p11 = scmp.lt.s32.totalorder %s2792_s21, %s2792_s21 }
  0x46   : > { %p2795_p7 = pnand %p2793_p4, %p3172_p13  ;;  %p2802_p0 = por %p2801_p11, %p2800_p8 }
  0x48   : > { %p2796_p9 = pneg %p2795_p7 }
  0x4a   : > { %p2803_p3 = pnand %p2802_p0, %p2796_p9 }
  0x4c   : > { %2806 = shalt.err (!%p2803_p3)
}
  0x4d   : > { %s2999_s25 = smov 64   ;;  %s3000_s27 = smov 4  }
  0x4e   : > { %2555 = dma.hbm_to_vmem [thread:$0]  (!%p3166_p12), %s3545_s3, 256, %s471_s26, [#allocation3], %s2999_s25, %s2999_s25, %s3000_s27  }
  0x4f   : > { %s3001_s18 = smov [#allocation7]   ;;  %s3002_s20 = smov [#allocation10]  }
  0x50   : > { %s496_s23 = sshll.u32 %s3001_s18, 4  ;;  %s528_s22 = sshll.u32 %s3002_s20, 4  ;;  %s497_s23 = int_to_ptr.vmem [resolvable:$true] %s496_s23  ;;  %s529_s22 = int_to_ptr.vmem [resolvable:$true] %s528_s22 }
  0x51   : > { %s2818_s4 = scalar_lea.vmem %s497_s23, 32  ;;  %p2826_p7 = scmp.lt.s32.totalorder %s497_s23, %s497_s23 }
  0x52   : > { %p2819_p1 = scmp.ne.s32.totalorder %s497_s23, %s2818_s4  ;;  %p2827_p9 = scmp.lt.s32.totalorder %s2818_s4, %s2818_s4 }
  0x54   : > { %p2821_p2 = pnand %p2819_p1, %p3172_p13  ;;  %p2828_p8 = por %p2827_p9, %p2826_p7 }
  0x56   : > { %p2822_p4 = pneg %p2821_p2 }
  0x58   : > { %p2829_p11 = pnand %p2828_p8, %p2822_p4 }
  0x5a   : > { %2832 = shalt.err (!%p2829_p11)
}
  0x5b   : > { %s3590_s21 = smov 1   ;;  %s3591_s26 = smov 16  }
  0x5c   : > { %2561 = dma.hbm_to_vmem [thread:$0]  (!%p3166_p12), %s3547_s5, 32, %s497_s23, [#allocation6], %s3591_s26, %s3591_s26, %s3590_s21  }
  0x5d   : > { %s2844_s20 = scalar_lea.vmem %s529_s22, 32  ;;  %p2852_p2 = scmp.lt.s32.totalorder %s529_s22, %s529_s22 }
  0x5e   : > { %p2845_p0 = scmp.ne.s32.totalorder %s529_s22, %s2844_s20  ;;  %p2853_p6 = scmp.lt.s32.totalorder %s2844_s20, %s2844_s20 }
  0x60   : > { %p2847_p3 = pnand %p2845_p0, %p3172_p13  ;;  %p2854_p7 = por %p2853_p6, %p2852_p2 }
  0x62   : > { %p2848_p1 = pneg %p2847_p3 }
  0x64   : > { %p2855_p4 = pnand %p2854_p7, %p2848_p1 }
  0x66   : > { %2858 = shalt.err (!%p2855_p4)
}
  0x67   : > { %2567 = dma.hbm_to_vmem [thread:$0]  (!%p3166_p12), %s3551_s9, 32, %s529_s22, [#allocation9], %s3591_s26, %s3591_s26, %s3590_s21  }
  0x68   : > { %s3003_s29 = smov [#allocation13]   ;;  %s3004_s23 = smov [#allocation14]  }
  0x69   : > { %s554_s18 = sshll.u32 %s3003_s29, 4  ;;  %s570_s25 = sshll.u32 %s3004_s23, 4  ;;  %s555_s18 = int_to_ptr.vmem [resolvable:$true] %s554_s18  ;;  %s571_s25 = int_to_ptr.vmem [resolvable:$true] %s570_s25 }
  0x6a   : > { %s2870_s27 = scalar_lea.vmem %s555_s18, 32  ;;  %p2878_p11 = scmp.lt.s32.totalorder %s555_s18, %s555_s18 }
  0x6b   : > { %p2871_p6 = scmp.ne.s32.totalorder %s555_s18, %s2870_s27  ;;  %p2879_p0 = scmp.lt.s32.totalorder %s2870_s27, %s2870_s27 }
  0x6d   : > { %p2873_p9 = pnand %p2871_p6, %p3172_p13  ;;  %p2880_p3 = por %p2879_p0, %p2878_p11 }
  0x6f   : > { %p2874_p8 = pneg %p2873_p9 }
  0x71   : > { %p2881_p1 = pnand %p2880_p3, %p2874_p8 }
  0x73   : > { %2884 = shalt.err (!%p2881_p1)
}
  0x74   : > { %2573 = dma.hbm_to_vmem [thread:$0]  (!%p3166_p12), %s3553_s11, 32, %s555_s18, [#allocation12], %s3591_s26, %s3591_s26, %s3590_s21  }
  0x75   : > { %s2896_s4 = scalar_lea.vmem %s571_s25, 32  ;;  %p2904_p6 = scmp.lt.s32.totalorder %s571_s25, %s571_s25 }
  0x76   : > { %p2897_p2 = scmp.ne.s32.totalorder %s571_s25, %s2896_s4  ;;  %p2905_p9 = scmp.lt.s32.totalorder %s2896_s4, %s2896_s4 }
  0x78   : > { %p2899_p7 = pnand %p2897_p2, %p3172_p13  ;;  %p2906_p11 = por %p2905_p9, %p2904_p6 }
  0x7a   : > { %p2900_p4 = pneg %p2899_p7 }
  0x7c   : > { %p2907_p8 = pnand %p2906_p11, %p2900_p4 }
  0x7e   : > { %2910 = shalt.err (!%p2907_p8)
}
  0x7f   : > { %2576 = dma.hbm_to_vmem [thread:$0]  (!%p3166_p12), %s3555_s13, 32, %s571_s25, [#allocation15], %s3591_s26, %s3591_s26, %s3590_s21  }
  0x80   : > { %611 = sbr.rel (%p3158_p10) target bundleno = 5349 (0x14e5), region = 92  ;;  %p3592_p13 = scmp.eq.s32.totalorder (!%p3158_p10), %s3130_s0, 0 }
  0x85   : > { %2954 = dma.done.wait (%p3592_p13), [#allocation3], 256   ;;  %p3593_p0 = pmov %p3592_p13 }
  0x87   : > { %2956 = vsyncadd (%p3593_p0), [#allocation3], 4294967040  ;;  %p3594_p3 = pmov %p3593_p0 }
  0x88   : > { %p3595_p1 = pmov %p3593_p0 }
  0x89   : > { %2958 = dma.done.wait (%p3594_p3), [#allocation6], 64  }
  0x8a   : > { %2960 = vsyncadd (%p3595_p1), [#allocation6], 4294967232  ;;  %p3596_p2 = pmov %p3593_p0 }
  0x8b   : > { %p3597_p12 = pmov %p3593_p0 }
  0x8c   : > { %2962 = dma.done.wait (%p3596_p2), [#allocation9], 64  }
  0x8d   : > { %2964 = vsyncadd (%p3597_p12), [#allocation9], 4294967232  ;;  %p3598_p10 = pmov %p3593_p0 }
  0x8e   : > { %p3599_p7 = pmov %p3593_p0 }
  0x8f   : > { %2966 = dma.done.wait (%p3598_p10), [#allocation12], 64  }
  0x90   : > { %2968 = vsyncadd (%p3599_p7), [#allocation12], 4294967232  ;;  %p3600_p4 = pmov %p3593_p0 }
  0x91   : > { %p3601_p6 = pmov %p3593_p0 }
  0x92   : > { %2970 = dma.done.wait (%p3600_p4), [#allocation15], 32  }
  0x93   : > { %2972 = vsyncadd (%p3601_p6), [#allocation15], 4294967264  ;;  %p695_p9 = scmp.lt.s32.totalorder %s3130_s0, 1  ;;  %v3005_v0 = vmov 0   ;;  %v3006_v1 = vmov 0.0   ;;  %s3602_s26 = sld [smem:[#allocation29_spill]]  ;;  %v704_v5 = vlaneseq }
  0x94   : > { %2650 = vset.pattern.permute.xlu0 %v3005_v0  ;;  %2382 = vmatprep.subr.bf16.mxu0 %v3006_v1  ;;  %vm3007_vm0 = vmmov 0   ;;  %v2651_v3 = vld [vmem:[#allocation2 + $0x8] sm:$0xff]   ;;  %v2652_v4 = vld [vmem:[#allocation2] sm:$0xff]   ;;  %vm730_vm2 = vcmask 261120   ;;  %s3603_s27 = sld [smem:[#allocation31_spill]]  ;;  %s3008_s29 = smov 96  }
  0x95   : > { %s3278_s1 = scalar_select %p695_p9, %s3130_s0, 1  ;;  %2390 = vmatprep.subr.bf16.mxu1 %v3006_v1  ;;  %2386 = vmatprep.mubr.msk.bf16.mxu0 %vm3007_vm0, %v3006_v1  ;;  %v705_v6 = vand.u32 127, %v704_v5  ;;  %v2653_v22 = vld [vmem:[%s3548_s6 + $0x8] sm:$0xff]   ;;  %v2654_v23 = vld [vmem:[%s3548_s6] sm:$0xff]   ;;  %v2251_v28 = vld [vmem:[#allocation5] ss:$0 sm:$0xff] }
  0x96   : > { %2394 = vmatprep.mubr.msk.bf16.mxu1 %vm3007_vm0, %v3006_v1  ;;  %2383 = vmatpush3.bf16.msra.mxu0 %v2651_v3  ;;  %v2252_v30 = vld [vmem:[#allocation7] ss:$0 sm:$0xff]  ;;  %v2253_v34 = vld [vmem:[#allocation8] ss:$0 sm:$0xff]  ;;  %s3010_s19 = smov 112   ;;  %vm882_vm3 = vcmask 130048  }
  0x97   : > { %s2246_s24 = sshll.u32 %s3278_s1, 3  ;;  %2384 = vmatprep.subr.bf16.mxu0 %v3006_v1  ;;  %2391 = vmatpush3.bf16.msra.mxu1 %v2653_v22  ;;  %vm929_vm4 = vcmask 64512   ;;  %s3012_s25 = smov 64   ;;  %vm947_vm5 = vcmask 1043456   ;;  %vm1359_vm6 = vcmask 523264  }
  0x98   : > { %2392 = vmatprep.subr.bf16.mxu1 %v3006_v1 }
  0x99   : > { %s698_s18 = scalar_lea.vmem %s3602_s26, %s2246_s24  ;;  %s3009_s24 = smov 80  }
  0x9a   : > { %v703_v2 = vld [vmem:[%s698_s18] sm:$0xff]  ;;  %2385 = vmatpush3.bf16.msra.mxu0 %v2652_v4  ;;  %s3604_s18 = sld [smem:[#allocation30_spill]]  ;;  %s3013_s26 = smov [#allocation16]  }
  0x9b   : > { %707 = vperm.xlu0 %2650, %v703_v2   ;;  %2398 = vmatprep.subr.bf16.mxu0 %v3006_v1  ;;  %v717_v10 = vld [vmem:[%s3603_s27] sm:$0xff]  ;;  %s2330_s27 = sshll.u32 %s3130_s0, 7 }
  0x9c   : > { %2393 = vmatpush3.bf16.msra.mxu1 %v2654_v23 }
  0x9d   : > { %2404 = vmatprep.subr.bf16.mxu1 %v3006_v1 }
  0xa0   : > { %s701_s23 = scalar_lea.vmem %s3604_s18, %s3278_s1  ;;  %s3011_s1 = smov 48  }
  0xa1   : > { %v3332_v46 = vld [vmem:[%s701_s23] ss:$0 sm:$0xff]  ;;  %s2915_s18 = sshll.u32 %s3013_s26, 4  ;;  %s2916_s18 = int_to_ptr.vmem [resolvable:$false] %s2915_s18 }
  0xa2   : > { %s2917_s0 = scalar_lea.vmem %s2916_s18, 256 }
 0x116   : > { %v708_v7 = vpop.permute.xlu0 %707 }
 0x117   : > { %vm709_vm1 = vcmp.eq.s32.totalorder %v708_v7, %v705_v6 }
 0x118   : > { %v2247_v8 = vsel %vm709_vm1, 1.0, %v3006_v1 }
 0x119   : > { %v712_v9 = vpack.c.bf16 %v2247_v8, %v2247_v8 }
 0x11b   : > { %2387 = vmatmul.mubr.msk.bf16.vlgmr.msra.gmra.mxu0 %vm730_vm2, %v712_v9 }
 0x11c   : > { %2400 = vmatprep.mubr.msk.bf16.mxu0 %vm3007_vm0, %v3006_v1 }
 0x1db   : > { %v768_v11 = vpop.f32.mrf.mxu0 }
 0x1dc   : > { %v3298_v12 = vadd.f32 %v768_v11, %v717_v10 }
 0x1dd   : > { %v2388_v13 = vpop.f32.mrf.mxu0 }
 0x1de   : > { %v777_v14 = vsel %vm730_vm2, %v3298_v12, 0.0 }
 0x1df   : > { %778 = vadd.xlane.f32.xlu0 %v777_v14  ;;  %v771_v15 = vpop.f32.mrf.mxu0 }
 0x1e1   : > { %v2389_v16 = vpop.f32.mrf.mxu0 }
 0x268   : > { %v779_v17 = vpop.xlane.xlu0 %778 }
 0x269   : > { %v781_v18 = vmul.f32 0.03125, %v779_v17 }
 0x26b   : > { %v782_v19 = vsub.f32 %v3298_v12, %v781_v18 }
 0x26d   : > { %v783_v20 = vmul.f32 %v782_v19, %v782_v19 }
 0x26f   : > { %v784_v21 = vsel %vm730_vm2, %v783_v20, 0.0  ;;  %v2656_v20 = vld [vmem:[%s3550_s8 + $0x8] sm:$0xff]  }
 0x270   : > { %785 = vadd.xlane.f32.xlu1 %v784_v21 }
 0x2f9   : > { %v786_v24 = vpop.xlane.xlu1 %785 }
 0x2fa   : > { %v787_v25 = vmul.f32 0.03125, %v786_v24 }
 0x2fc   : > { %v788_v26 = vadd.f32 1e-05, %v787_v25 }
 0x2fe   : > { %2673 = vrsqrt.f32 %v788_v26 }
 0x30b   : > { %v2674_v27 = vpop.eup %2673 }
 0x30c   : > { %v790_v29 = vmul.f32 %v2674_v27, %v782_v19  ;;  %v2655_v19 = vld [vmem:[%s3550_s8] sm:$0xff]  }
 0x30e   : > { %v797_v31 = vmul.f32 %v2251_v28, %v790_v29 }
 0x310   : > { %v804_v32 = vadd.f32 %v2252_v30, %v797_v31 }
 0x312   : > { %v805_v33 = vpack.c.bf16 %v804_v32, %v804_v32 }
 0x314   : > { %2395 = vmatmul.mubr.msk.bf16.vlgmr.msra.gmra.mxu1 %vm730_vm2, %v805_v33 }
 0x315   : > { %2406 = vmatprep.mubr.msk.bf16.mxu1 %vm3007_vm0, %v3006_v1 }
 0x3d4   : > { %v866_v35 = vpop.f32.mrf.mxu1 }
 0x3d5   : > { %v867_v36 = vadd.f32 %v2253_v34, %v866_v35 }
 0x3d6   : > { %v2396_v37 = vpop.f32.mrf.mxu1 }
 0x3d7   : > { %v872_v38 = vpack.c.bf16 %v867_v36, %v867_v36  ;;  %v2266_v37 = vld [vmem:[#allocation10] ss:$0 sm:$0xff] }
 0x3d8   : > { %v869_v39 = vpop.f32.mrf.mxu1 }
 0x3d9   : > { %880 = vrot.lane.b32.xlu1 %v872_v38, %s3008_s29 }
 0x3da   : > { %v2397_v40 = vpop.f32.mrf.mxu1 }
 0x3dd   : > { %996 = vrot.lane.b32.xlu1 %v872_v38, %s3009_s24 }
 0x3e1   : > { %994 = vrot.lane.b32.xlu1 %v872_v38, %s3010_s19 }
 0x44b   : > { %v881_v41 = vpop.permute.xlu1 %880 }
 0x44c   : > { %v887_v42 = vsel %vm882_vm3, %v881_v41, 0 }
 0x44d   : > { %2399 = vmatpush3.bf16.xpose.msra.mxu0 %v887_v42 }
 0x44e   : > { %2410 = vmatprep.subr.bf16.mxu0 %v3006_v1 }
 0x44f   : > { %v997_v43 = vpop.permute.xlu1 %996 }
 0x450   : > { %v1002_v44 = vsel %vm882_vm3, %v997_v43, 0 }
 0x453   : > { %v995_v45 = vpop.permute.xlu1 %994 }
 0x454   : > { %2401 = vmatmul.mubr.msk.bf16.vlgmr.msra.gmra.mxu0 %vm882_vm3, %v872_v38 }
 0x455   : > { %2411 = vmatpush3.bf16.xpose.msra.mxu0 %v1002_v44  ;;  %2412 = vmatprep.mubr.msk.bf16.mxu0 %vm3007_vm0, %v3006_v1 }
 0x456   : > { %2422 = vmatprep.subr.bf16.mxu0 %v3006_v1 }
 0x45c   : > { %2413 = vmatmul.mubr.msk.bf16.vlgmr.msra.gmra.mxu0 %vm882_vm3, %v995_v45 }
 0x45d   : > { %2424 = vmatprep.mubr.msk.bf16.mxu0 %vm3007_vm0, %v3006_v1  ;;  %2423 = vmatpush3.bf16.msra.mxu0 %v2656_v20 }
 0x45e   : > { %2434 = vmatprep.subr.bf16.mxu0 %v3006_v1 }
 0x514   : > { %v923_v47 = vpop.f32.mrf.mxu0 }
 0x515   : > { %v924_v48 = vadd.f32 %v3332_v46, %v923_v47 }
 0x516   : > { %v2402_v49 = vpop.f32.mrf.mxu0 }
 0x517   : > { %v930_v50 = vsel %vm929_vm4, %v924_v48, -inf }
 0x518   : > { %931 = vmax.xlane.f32.xlu1 %v930_v50  ;;  %v926_v51 = vpop.f32.mrf.mxu0  ;;  %v2658_v50 = vld [vmem:[%s3554_s12] sm:$0xff]  }
 0x51a   : > { %v2403_v52 = vpop.f32.mrf.mxu0 }
 0x51c   : > { %v1038_v53 = vpop.f32.mrf.mxu0 }
 0x51d   : > { %v1039_v54 = vadd.f32 %v3332_v46, %v1038_v53 }
 0x51e   : > { %v2414_v55 = vpop.f32.mrf.mxu0 }
 0x51f   : > { %v1044_v56 = vsel %vm929_vm4, %v1039_v54, -inf  ;;  %v2267_v55 = vld [vmem:[#allocation11] ss:$0 sm:$0xff] }
 0x520   : > { %1045 = vmax.xlane.f32.xlu0 %v1044_v56  ;;  %v1041_v57 = vpop.f32.mrf.mxu0 }
 0x521   : > { %v2268_v57 = vld [vmem:[#allocation13] ss:$0 sm:$0xff] }
 0x522   : > { %v2415_v58 = vpop.f32.mrf.mxu0 }
 0x529   : > { %1056 = vrot.lane.b32.xlu1 %v872_v38, %s3011_s1 }
 0x5a1   : > { %v932_v59 = vpop.xlane.xlu1 %931 }
 0x5a2   : > { %v933_v60 = vsub.f32 %v924_v48, %v932_v59 }
 0x5a4   : > { %v934_v61 = vmul.f32 1.442695, %v933_v60 }
 0x5a5   : > { %v1057_v13 = vpop.permute.xlu1 %1056 }
 0x5a6   : > { %2675 = vpow2.f32 %v934_v61  ;;  %v1062_v15 = vsel %vm947_vm5, %v1057_v13, 0  ;;  %v2659_v61 = vld [vmem:[%s3556_s14 + $0x18] sm:$0xff]  }
 0x5a9   : > { %v1046_v62 = vpop.xlane.xlu0 %1045 }
 0x5aa   : > { %v1047_v63 = vsub.f32 %v1039_v54, %v1046_v62  ;;  %v2660_v62 = vld [vmem:[%s3556_s14 + $0x10] sm:$0xff]  }
 0x5ac   : > { %v1048_v0 = vmul.f32 1.442695, %v1047_v63  ;;  %v2661_v63 = vld [vmem:[%s3556_s14 + $0x8] sm:$0xff]  }
 0x5ae   : > { %2677 = vpow2.f32 %v1048_v0  ;;  %v2662_v0 = vld [vmem:[%s3556_s14] sm:$0xff]  }
 0x5b3   : > { %v2676_v2 = vpop.eup %2675 }
 0x5b4   : > { %v936_v3 = vsel %vm929_vm4, %v2676_v2, 0.0 }
 0x5b5   : > { %937 = vadd.xlane.f32.xlu0 %v936_v3 }
 0x5bb   : > { %v2678_v4 = vpop.eup %2677 }
 0x5bc   : > { %v1050_v5 = vsel %vm929_vm4, %v2678_v4, 0.0 }
 0x5bd   : > { %1051 = vadd.xlane.f32.xlu0 %v1050_v5 }
 0x5d3   : > { %942 = vrot.lane.b32.xlu0 %v872_v38, %s3012_s25 }
 0x63e   : > { %v938_v6 = vpop.xlane.xlu0 %937 }
 0x63f   : > { %2679 = vrcp.f32 %v938_v6 }
 0x646   : > { %v1052_v7 = vpop.xlane.xlu0 %1051 }
 0x647   : > { %2681 = vrcp.f32 %v1052_v7 }
 0x64a   : > { %v943_v8 = vpop.permute.xlu0 %942 }
 0x64b   : > { %v949_v9 = vsel %vm947_vm5, %v943_v8, 0 }
 0x64c   : > { %v2680_v10 = vpop.eup %2679  ;;  %2405 = vmatpush3.bf16.msra.mxu1 %v949_v9 }
 0x64d   : > { %2416 = vmatprep.subr.bf16.mxu1 %v3006_v1  ;;  %v940_v11 = vmul.f32 %v2680_v10, %v2676_v2  ;;  %v2269_v2 = vld [vmem:[#allocation14] ss:$0 sm:$0xff] }
 0x64f   : > { %v941_v14 = vpack.c.bf16 %v940_v11, %v940_v11 }
 0x651   : > { %2407 = vmatmul.mubr.msk.bf16.vlgmr.msra.gmra.mxu1 %vm929_vm4, %v941_v14 }
 0x652   : > { %2417 = vmatpush3.bf16.msra.mxu1 %v1062_v15  ;;  %2418 = vmatprep.mubr.msk.bf16.mxu1 %vm3007_vm0, %v3006_v1 }
 0x653   : > { %2428 = vmatprep.subr.bf16.mxu1 %v3006_v1 }
 0x654   : > { %v2682_v16 = vpop.eup %2681 }
 0x655   : > { %v1054_v17 = vmul.f32 %v2682_v16, %v2678_v4 }
 0x657   : > { %v1055_v18 = vpack.c.bf16 %v1054_v17, %v1054_v17 }
 0x659   : > { %2419 = vmatmul.mubr.msk.bf16.vlgmr.msra.gmra.mxu1 %vm929_vm4, %v1055_v18 }
 0x65a   : > { %2430 = vmatprep.mubr.msk.bf16.mxu1 %vm3007_vm0, %v3006_v1  ;;  %2429 = vmatpush3.bf16.msra.mxu1 %v2655_v19  ;;  %v2273_v19 = vld [vmem:[%s3557_s15] ss:$0 sm:$0xff] }
 0x65b   : > { %2442 = vmatprep.subr.bf16.mxu1 %v3006_v1 }
 0x711   : > { %v985_v21 = vpop.f32.mrf.mxu1 }
 0x712   : > { %v991_v22 = vpack.c.bf16 %v985_v21, %v985_v21 }
 0x713   : > { %v2408_v23 = vpop.f32.mrf.mxu1 }
 0x714   : > { %2431 = vmatmul.mubr.msk.bf16.vlgmr.msra.gmra.mxu1 %vm882_vm3, %v991_v22 }
 0x715   : > { %v988_v24 = vpop.f32.mrf.mxu1  ;;  %2450 = vmatprep.mubr.msk.bf16.mxu1 %vm3007_vm0, %v3006_v1  ;;  %2443 = vmatpush3.bf16.msra.mxu1 %v2659_v61 }
 0x716   : > { %2444 = vmatprep.subr.bf16.mxu1 %v3006_v1 }
 0x717   : > { %v2409_v25 = vpop.f32.mrf.mxu1 }
 0x719   : > { %v1098_v26 = vpop.f32.mrf.mxu1  ;;  %2445 = vmatpush3.bf16.msra.mxu1 %v2660_v62 }
 0x71a   : > { %v1104_v27 = vpack.c.bf16 %v1098_v26, %v1098_v26  ;;  %2446 = vmatprep.subr.bf16.mxu1 %v3006_v1 }
 0x71b   : > { %v2420_v28 = vpop.f32.mrf.mxu1 }
 0x71c   : > { %2425 = vmatmul.mubr.msk.bf16.vlgmr.msra.gmra.mxu0 %vm882_vm3, %v1104_v27 }
 0x71d   : > { %v1101_v29 = vpop.f32.mrf.mxu1  ;;  %2438 = vmatprep.mubr.msk.bf16.mxu0 %vm3007_vm0, %v3006_v1  ;;  %2447 = vmatpush3.bf16.msra.mxu1 %v2661_v63 }
 0x71e   : > { %2448 = vmatprep.subr.bf16.mxu1 %v3006_v1 }
 0x71f   : > { %v2421_v30 = vpop.f32.mrf.mxu1 }
 0x721   : > { %2449 = vmatpush3.bf16.msra.mxu1 %v2662_v0 }
 0x722   : > { %2468 = vmatprep.subr.bf16.mxu1 %v3006_v1 }
 0x7d4   : > { %v1199_v31 = vpop.f32.mrf.mxu1 }
 0x7d6   : > { %v2432_v32 = vpop.f32.mrf.mxu1 }
 0x7d7   : > { %v2663_v32 = vld [vmem:[%s3548_s6 + $0x18] sm:$0xff]  }
 0x7d8   : > { %v1202_v33 = vpop.f32.mrf.mxu1 }
 0x7d9   : > { %v2664_v33 = vld [vmem:[%s3548_s6 + $0x10] sm:$0xff]  }
 0x7da   : > { %v2433_v34 = vpop.f32.mrf.mxu1 }
 0x7dc   : > { %v1150_v35 = vpop.f32.mrf.mxu0 }
 0x7dd   : > { %v1200_v36 = vadd.f32 %v1199_v31, %v1150_v35 }
 0x7de   : > { %v2426_v38 = vpop.f32.mrf.mxu0 }
 0x7df   : > { %v1205_v39 = vadd.f32 %v1200_v36, %v3298_v12  ;;  %v2657_v12 = vld [vmem:[%s3554_s12 + $0x8] sm:$0xff]   ;;  %v2279_v38 = vld [vmem:[#allocation5 + $0x1] ss:$0 sm:$0xff] }
 0x7e0   : > { %v1153_v40 = vpop.f32.mrf.mxu0  ;;  %2435 = vmatpush3.bf16.msra.mxu0 %v2657_v12 }
 0x7e1   : > { %v3367_v41 = vadd.f32 %v2266_v37, %v1205_v39  ;;  %2436 = vmatprep.subr.bf16.mxu0 %v3006_v1  ;;  %v2280_v40 = vld [vmem:[#allocation7 + $0x1] ss:$0 sm:$0xff] }
 0x7e2   : > { %v2427_v42 = vpop.f32.mrf.mxu0 }
 0x7e3   : > { %v1216_v43 = vsel %vm730_vm2, %v3367_v41, 0.0 }
 0x7e4   : > { %1217 = vadd.xlane.f32.xlu0 %v1216_v43  ;;  %2437 = vmatpush3.bf16.msra.mxu0 %v2658_v50 }
 0x7e5   : > { %2454 = vmatprep.subr.bf16.mxu0 %v3006_v1 }
 0x86d   : > { %v1218_v44 = vpop.xlane.xlu0 %1217 }
 0x86e   : > { %v1219_v45 = vmul.f32 0.03125, %v1218_v44  ;;  %v2285_v44 = vld [vmem:[#allocation8 + $0x1] ss:$0 sm:$0xff] }
 0x870   : > { %v1220_v47 = vsub.f32 %v3367_v41, %v1219_v45 }
 0x872   : > { %v1221_v48 = vmul.f32 %v1220_v47, %v1220_v47 }
 0x874   : > { %v1222_v49 = vsel %vm730_vm2, %v1221_v48, 0.0 }
 0x875   : > { %1223 = vadd.xlane.f32.xlu1 %v1222_v49 }
 0x8fe   : > { %v1224_v51 = vpop.xlane.xlu1 %1223 }
 0x8ff   : > { %v1225_v52 = vmul.f32 0.03125, %v1224_v51 }
 0x901   : > { %v1226_v53 = vadd.f32 1e-05, %v1225_v52 }
 0x903   : > { %2683 = vrsqrt.f32 %v1226_v53 }
 0x910   : > { %v2684_v54 = vpop.eup %2683 }
 0x911   : > { %v1228_v56 = vmul.f32 %v2684_v54, %v1220_v47 }
 0x913   : > { %v1235_v58 = vmul.f32 %v2267_v55, %v1228_v56 }
 0x915   : > { %v1242_v59 = vadd.f32 %v2268_v57, %v1235_v58 }
 0x917   : > { %v1243_v60 = vpack.c.bf16 %v1242_v59, %v1242_v59 }
 0x919   : > { %2439 = vmatmul.mubr.msk.bf16.vlgmr.msra.gmra.mxu0 %vm730_vm2, %v1243_v60 }
 0x91a   : > { %2458 = vmatprep.mubr.msk.bf16.mxu0 %vm3007_vm0, %v3006_v1  ;;  %2455 = vmatpush3.bf16.msra.mxu0 %v2663_v32 }
 0x91b   : > { %2456 = vmatprep.subr.bf16.mxu0 %v3006_v1 }
 0x91e   : > { %2457 = vmatpush3.bf16.msra.mxu0 %v2664_v33 }
 0x91f   : > { %2462 = vmatprep.subr.bf16.mxu0 %v3006_v1 }
 0x9d9   : > { %v1304_v3 = vpop.f32.mrf.mxu0 }
 0x9da   : > { %v1305_v4 = vadd.f32 %v2269_v2, %v1304_v3 }
 0x9db   : > { %v2440_v5 = vpop.f32.mrf.mxu0 }
 0x9dc   : > { %v1310_v6 = vmul.f32 %v1305_v4, %v1305_v4 }
 0x9dd   : > { %v1307_v7 = vpop.f32.mrf.mxu0 }
 0x9de   : > { %v1311_v8 = vmul.f32 %v1310_v6, %v1305_v4 }
 0x9df   : > { %v2441_v9 = vpop.f32.mrf.mxu0 }
 0x9e0   : > { %v1312_v10 = vmul.f32 0.044715, %v1311_v8 }
 0x9e2   : > { %v1313_v11 = vadd.f32 %v1312_v10, %v1305_v4 }
 0x9e4   : > { %v1314_v13 = vmul.f32 0.7978846, %v1313_v11 }
 0x9e6   : > { %2685 = vtanh.f32 %v1314_v13 }
 0x9f3   : > { %v2686_v14 = vpop.eup %2685 }
 0x9f4   : > { %v1316_v15 = vadd.f32 1.0, %v2686_v14 }
 0x9f6   : > { %v1317_v16 = vmul.f32 0.5, %v1316_v15 }
 0x9f8   : > { %v1318_v17 = vmul.f32 %v1317_v16, %v1305_v4 }
 0x9fa   : > { %v1319_v18 = vpack.c.bf16 %v1318_v17, %v1318_v17 }
 0x9fc   : > { %2451 = vmatmul.mubr.msk.bf16.vlgmr.msra.gmra.mxu1 %vm1359_vm6, %v1319_v18 }
 0x9fd   : > { %2470 = vmatprep.mubr.msk.bf16.mxu1 %vm3007_vm0, %v3006_v1 }
 0xabc   : > { %v1397_v20 = vpop.f32.mrf.mxu1 }
 0xabd   : > { %v1398_v21 = vadd.f32 %v2273_v19, %v1397_v20 }
 0xabe   : > { %v2452_v22 = vpop.f32.mrf.mxu1 }
 0xabf   : > { %v3407_v23 = vadd.f32 %v1398_v21, %v3367_v41 }
 0xac0   : > { %v1400_v24 = vpop.f32.mrf.mxu1 }
 0xac1   : > { %v1408_v25 = vsel %vm730_vm2, %v3407_v23, 0.0 }
 0xac2   : > { %1409 = vadd.xlane.f32.xlu0 %v1408_v25  ;;  %v2453_v26 = vpop.f32.mrf.mxu1 }
 0xb4b   : > { %v1410_v27 = vpop.xlane.xlu0 %1409 }
 0xb4c   : > { %v1411_v28 = vmul.f32 0.03125, %v1410_v27 }
 0xb4e   : > { %v1412_v29 = vsub.f32 %v3407_v23, %v1411_v28  ;;  %v2665_v28 = vld [vmem:[%s3550_s8 + $0x10] sm:$0xff]  }
 0xb50   : > { %v1413_v30 = vmul.f32 %v1412_v29, %v1412_v29 }
 0xb52   : > { %v1414_v31 = vsel %vm730_vm2, %v1413_v30, 0.0 }
 0xb53   : > { %1415 = vadd.xlane.f32.xlu0 %v1414_v31 }
 0xbdc   : > { %v1416_v34 = vpop.xlane.xlu0 %1415 }
 0xbdd   : > { %v1417_v35 = vmul.f32 0.03125, %v1416_v34 }
 0xbdf   : > { %v1418_v36 = vadd.f32 1e-05, %v1417_v35 }
 0xbe1   : > { %2687 = vrsqrt.f32 %v1418_v36 }
 0xbee   : > { %v2688_v37 = vpop.eup %2687 }
 0xbef   : > { %v1420_v39 = vmul.f32 %v2688_v37, %v1412_v29  ;;  %v2666_v29 = vld [vmem:[%s3550_s8 + $0x18] sm:$0xff]  }
 0xbf1   : > { %v1427_v41 = vmul.f32 %v2279_v38, %v1420_v39 }
 0xbf3   : > { %v1434_v42 = vadd.f32 %v2280_v40, %v1427_v41 }
 0xbf5   : > { %v1435_v43 = vpack.c.bf16 %v1434_v42, %v1434_v42 }
 0xbf7   : > { %2459 = vmatmul.mubr.msk.bf16.vlgmr.msra.gmra.mxu0 %vm730_vm2, %v1435_v43 }
 0xbf8   : > { %2464 = vmatprep.mubr.msk.bf16.mxu0 %vm3007_vm0, %v3006_v1 }
 0xcb7   : > { %v1498_v45 = vpop.f32.mrf.mxu0 }
 0xcb8   : > { %v1499_v47 = vadd.f32 %v2285_v44, %v1498_v45 }
 0xcb9   : > { %v2460_v48 = vpop.f32.mrf.mxu0 }
 0xcba   : > { %v1504_v49 = vpack.c.bf16 %v1499_v47, %v1499_v47  ;;  %v2301_v47 = vld [vmem:[#allocation10 + $0x1] ss:$0 sm:$0xff] }
 0xcbb   : > { %v1501_v12 = vpop.f32.mrf.mxu0 }
 0xcbc   : > { %1620 = vrot.lane.b32.xlu1 %v1504_v49, %s3009_s24  ;;  %1506 = vrot.lane.b32.xlu0 %v1504_v49, %s3008_s29  ;;  %s3605_s24 = sld [smem:[#allocation33_spill]] }
 0xcbd   : > { %v2461_v50 = vpop.f32.mrf.mxu0 }
 0xcc0   : > { %1618 = vrot.lane.b32.xlu0 %v1504_v49, %s3010_s19 }
 0xcc2   : > { %s2076_s19 = scalar_lea.hbm %s3605_s24, %s2330_s27 }
 0xd2e   : > { %v1507_v51 = vpop.permute.xlu0 %1506  ;;  %v1621_v53 = vpop.permute.xlu1 %1620 }
 0xd2f   : > { %v1512_v52 = vsel %vm882_vm3, %v1507_v51, 0  ;;  %v1626_v54 = vsel %vm882_vm3, %v1621_v53, 0 }
 0xd30   : > { %2463 = vmatpush3.bf16.xpose.msra.mxu0 %v1512_v52 }
 0xd31   : > { %2474 = vmatprep.subr.bf16.mxu0 %v3006_v1 }
 0xd32   : > { %v1619_v55 = vpop.permute.xlu0 %1618 }
 0xd37   : > { %2465 = vmatmul.mubr.msk.bf16.vlgmr.msra.gmra.mxu0 %vm882_vm3, %v1504_v49 }
 0xd38   : > { %2475 = vmatpush3.bf16.xpose.msra.mxu0 %v1626_v54  ;;  %2476 = vmatprep.mubr.msk.bf16.mxu0 %vm3007_vm0, %v3006_v1 }
 0xd39   : > { %2486 = vmatprep.subr.bf16.mxu0 %v3006_v1 }
 0xd3f   : > { %2477 = vmatmul.mubr.msk.bf16.vlgmr.msra.gmra.mxu0 %vm882_vm3, %v1619_v55 }
 0xd40   : > { %2488 = vmatprep.mubr.msk.bf16.mxu0 %vm3007_vm0, %v3006_v1  ;;  %2487 = vmatpush3.bf16.msra.mxu0 %v2666_v29 }
 0xd41   : > { %2498 = vmatprep.subr.bf16.mxu0 %v3006_v1 }
 0xdf7   : > { %v1548_v56 = vpop.f32.mrf.mxu0 }
 0xdf8   : > { %v1549_v57 = vadd.f32 %v3332_v46, %v1548_v56 }
 0xdf9   : > { %v2466_v58 = vpop.f32.mrf.mxu0 }
 0xdfa   : > { %v1554_v59 = vsel %vm929_vm4, %v1549_v57, -inf  ;;  %v2667_v58 = vld [vmem:[%s3554_s12 + $0x18] sm:$0xff]  }
 0xdfb   : > { %1555 = vmax.xlane.f32.xlu0 %v1554_v59  ;;  %v1551_v60 = vpop.f32.mrf.mxu0 }
 0xdfd   : > { %v2467_v61 = vpop.f32.mrf.mxu0 }
 0xdff   : > { %v1662_v62 = vpop.f32.mrf.mxu0 }
 0xe00   : > { %v1663_v63 = vadd.f32 %v3332_v46, %v1662_v62 }
 0xe01   : > { %v2478_v0 = vpop.f32.mrf.mxu0 }
 0xe02   : > { %v1668_v2 = vsel %vm929_vm4, %v1663_v63, -inf }
 0xe03   : > { %1669 = vmax.xlane.f32.xlu1 %v1668_v2  ;;  %v1665_v3 = vpop.f32.mrf.mxu0  ;;  %v2303_v2 = vld [vmem:[#allocation13 + $0x1] ss:$0 sm:$0xff] }
 0xe05   : > { %v2479_v4 = vpop.f32.mrf.mxu0 }
 0xe14   : > { %1566 = vrot.lane.b32.xlu1 %v1504_v49, %s3012_s25  ;;  %s692_s25 = sand.u32 1, %s2983_s28  }
 0xe15   : > { %s2245_s30 = sshll.u32 %s692_s25, 3 }
 0xe16   : > { %s694_s22 = scalar_lea.vmem [#allocation16], %s2245_s30 }
 0xe17   : > { %s2078_s20 = sshll.u32 %s694_s22, 4  ;;  %s2079_s20 = int_to_ptr.vmem [resolvable:$true] %s2078_s20 }
 0xe18   : > { %s2911_s21 = scalar_lea.vmem %s2079_s20, 128  ;;  %p2918_p0 = scmp.lt.s32.totalorder %s2079_s20, %s2916_s18 }
 0xe19   : > { %p2912_p11 = scmp.ne.s32.totalorder %s2079_s20, %s2911_s21  ;;  %p2919_p3 = scmp.lt.s32.totalorder %s2917_s0, %s2911_s21 }
 0xe1b   : > { %p2913_p8 = pnand %p2912_p11, %p3147_p5  ;;  %p2920_p1 = por %p2919_p3, %p2918_p0 }
 0xe1d   : > { %p2914_p13 = pneg %p2913_p8 }
 0xe1f   : > { %p2921_p2 = pnand %p2920_p1, %p2914_p13 }
 0xe84   : > { %v1556_v5 = vpop.xlane.xlu0 %1555 }
 0xe85   : > { %v1557_v6 = vsub.f32 %v1549_v57, %v1556_v5 }
 0xe87   : > { %v1558_v7 = vmul.f32 1.442695, %v1557_v6  ;;  %v2669_v6 = vld [vmem:[%s3556_s14 + $0x38] sm:$0xff]  }
 0xe89   : > { %2689 = vpow2.f32 %v1558_v7  ;;  %v2670_v7 = vld [vmem:[%s3556_s14 + $0x30] sm:$0xff]  }
 0xe8c   : > { %v1670_v8 = vpop.xlane.xlu1 %1669 }
 0xe8d   : > { %v1671_v9 = vsub.f32 %v1663_v63, %v1670_v8  ;;  %v2302_v63 = vld [vmem:[#allocation11 + $0x1] ss:$0 sm:$0xff]  ;;  %v2671_v8 = vld [vmem:[%s3556_s14 + $0x28] sm:$0xff]  }
 0xe8f   : > { %v1672_v10 = vmul.f32 1.442695, %v1671_v9  ;;  %v2672_v9 = vld [vmem:[%s3556_s14 + $0x20] sm:$0xff]  }
 0xe90   : > { %v1567_v11 = vpop.permute.xlu1 %1566 }
 0xe91   : > { %2691 = vpow2.f32 %v1672_v10  ;;  %v1572_v13 = vsel %vm947_vm5, %v1567_v11, 0  ;;  %v2308_v10 = vld [vmem:[#allocation14 + $0x1] ss:$0 sm:$0xff] }
 0xe92   : > { %2469 = vmatpush3.bf16.msra.mxu1 %v1572_v13 }
 0xe93   : > { %2480 = vmatprep.subr.bf16.mxu1 %v3006_v1 }
 0xe96   : > { %v2690_v46 = vpop.eup %2689 }
 0xe97   : > { %v1560_v14 = vsel %vm929_vm4, %v2690_v46, 0.0 }
 0xe98   : > { %1561 = vadd.xlane.f32.xlu0 %v1560_v14 }
 0xe9e   : > { %v2692_v15 = vpop.eup %2691 }
 0xe9f   : > { %v1674_v16 = vsel %vm929_vm4, %v2692_v15, 0.0 }
 0xea0   : > { %1675 = vadd.xlane.f32.xlu0 %v1674_v16 }
 0xeb6   : > { %1680 = vrot.lane.b32.xlu0 %v1504_v49, %s3011_s1  ;;  %s2065_s1 = scalar_lea.sflag [#allocation4], %s692_s25 }
 0xf21   : > { %v1562_v17 = vpop.xlane.xlu0 %1561 }
 0xf22   : > { %2693 = vrcp.f32 %v1562_v17 }
 0xf29   : > { %v1676_v18 = vpop.xlane.xlu0 %1675 }
 0xf2a   : > { %2695 = vrcp.f32 %v1676_v18 }
 0xf2d   : > { %v1681_v21 = vpop.permute.xlu0 %1680 }
 0xf2e   : > { %v1686_v24 = vsel %vm947_vm5, %v1681_v21, 0 }
 0xf2f   : > { %v2694_v19 = vpop.eup %2693 }
 0xf30   : > { %v1564_v20 = vmul.f32 %v2694_v19, %v2690_v46 }
 0xf32   : > { %v1565_v22 = vpack.c.bf16 %v1564_v20, %v1564_v20 }
 0xf34   : > { %2471 = vmatmul.mubr.msk.bf16.vlgmr.msra.gmra.mxu1 %vm929_vm4, %v1565_v22 }
 0xf35   : > { %2481 = vmatpush3.bf16.msra.mxu1 %v1686_v24  ;;  %2482 = vmatprep.mubr.msk.bf16.mxu1 %vm3007_vm0, %v3006_v1 }
 0xf36   : > { %2492 = vmatprep.subr.bf16.mxu1 %v3006_v1 }
 0xf37   : > { %v2696_v25 = vpop.eup %2695 }
 0xf38   : > { %v1678_v26 = vmul.f32 %v2696_v25, %v2692_v15 }
 0xf3a   : > { %v1679_v27 = vpack.c.bf16 %v1678_v26, %v1678_v26  ;;  %v2321_v26 = vld [vmem:[%s3557_s15 + $0x1] ss:$0 sm:$0xff] }
 0xf3c   : > { %2483 = vmatmul.mubr.msk.bf16.vlgmr.msra.gmra.mxu1 %vm929_vm4, %v1679_v27 }
 0xf3d   : > { %2494 = vmatprep.mubr.msk.bf16.mxu1 %vm3007_vm0, %v3006_v1  ;;  %2493 = vmatpush3.bf16.msra.mxu1 %v2665_v28 }
 0xf3e   : > { %2506 = vmatprep.subr.bf16.mxu1 %v3006_v1 }
 0xff4   : > { %v1608_v30 = vpop.f32.mrf.mxu1 }
 0xff5   : > { %v1614_v31 = vpack.c.bf16 %v1608_v30, %v1608_v30 }
 0xff6   : > { %v2472_v32 = vpop.f32.mrf.mxu1 }
 0xff7   : > { %2495 = vmatmul.mubr.msk.bf16.vlgmr.msra.gmra.mxu1 %vm882_vm3, %v1614_v31 }
 0xff8   : > { %v1611_v33 = vpop.f32.mrf.mxu1  ;;  %2514 = vmatprep.mubr.msk.bf16.mxu1 %vm3007_vm0, %v3006_v1  ;;  %2507 = vmatpush3.bf16.msra.mxu1 %v2669_v6 }
 0xff9   : > { %2508 = vmatprep.subr.bf16.mxu1 %v3006_v1 }
 0xffa   : > { %v2473_v34 = vpop.f32.mrf.mxu1 }
 0xffc   : > { %v1722_v35 = vpop.f32.mrf.mxu1  ;;  %2509 = vmatpush3.bf16.msra.mxu1 %v2670_v7 }
 0xffd   : > { %v1728_v36 = vpack.c.bf16 %v1722_v35, %v1722_v35  ;;  %2510 = vmatprep.subr.bf16.mxu1 %v3006_v1 }
 0xffe   : > { %v2484_v37 = vpop.f32.mrf.mxu1 }
 0xfff   : > { %2489 = vmatmul.mubr.msk.bf16.vlgmr.msra.gmra.mxu0 %vm882_vm3, %v1728_v36 }
0x1000   : > { %v1725_v38 = vpop.f32.mrf.mxu1  ;;  %2502 = vmatprep.mubr.msk.bf16.mxu0 %vm3007_vm0, %v3006_v1  ;;  %2499 = vmatpush3.bf16.msra.mxu0 %v2667_v58 }
0x1001   : > { %2500 = vmatprep.subr.bf16.mxu0 %v3006_v1  ;;  %2511 = vmatpush3.bf16.msra.mxu1 %v2671_v8 }
0x1002   : > { %v2485_v39 = vpop.f32.mrf.mxu1  ;;  %2512 = vmatprep.subr.bf16.mxu1 %v3006_v1 }
0x1005   : > { %2513 = vmatpush3.bf16.msra.mxu1 %v2672_v9 }
0x10b7   : > { %v1823_v40 = vpop.f32.mrf.mxu1 }
0x10b9   : > { %v2496_v41 = vpop.f32.mrf.mxu1 }
0x10bb   : > { %v1826_v42 = vpop.f32.mrf.mxu1 }
0x10bd   : > { %v2497_v43 = vpop.f32.mrf.mxu1 }
0x10be   : > { %v2327_v43 = vld [vmem:[%s3558_s16] ss:$0 sm:$0xff] }
0x10bf   : > { %v1774_v44 = vpop.f32.mrf.mxu0 }
0x10c0   : > { %v1824_v45 = vadd.f32 %v1823_v40, %v1774_v44 }
0x10c1   : > { %v2490_v48 = vpop.f32.mrf.mxu0 }
0x10c2   : > { %v1829_v49 = vadd.f32 %v1824_v45, %v3407_v23  ;;  %v2668_v23 = vld [vmem:[%s3554_s12 + $0x10] sm:$0xff]   ;;  %v2328_v45 = vld [vmem:[%s3559_s17] ss:$0 sm:$0xff] }
0x10c3   : > { %v1777_v12 = vpop.f32.mrf.mxu0  ;;  %2501 = vmatpush3.bf16.msra.mxu0 %v2668_v23 }
0x10c4   : > { %v1838_v50 = vadd.f32 %v2301_v47, %v1829_v49 }
0x10c5   : > { %v2491_v51 = vpop.f32.mrf.mxu0 }
0x10c6   : > { %v1843_v52 = vsel %vm730_vm2, %v1838_v50, 0.0 }
0x10c7   : > { %1844 = vadd.xlane.f32.xlu1 %v1843_v52 }
0x1150   : > { %v1845_v53 = vpop.xlane.xlu1 %1844 }
0x1151   : > { %v1846_v54 = vmul.f32 0.03125, %v1845_v53 }
0x1153   : > { %v1847_v55 = vsub.f32 %v1838_v50, %v1846_v54 }
0x1155   : > { %v1848_v56 = vmul.f32 %v1847_v55, %v1847_v55 }
0x1157   : > { %v1849_v57 = vsel %vm730_vm2, %v1848_v56, 0.0 }
0x1158   : > { %1850 = vadd.xlane.f32.xlu0 %v1849_v57 }
0x11e1   : > { %v1851_v59 = vpop.xlane.xlu0 %1850 }
0x11e2   : > { %v1852_v60 = vmul.f32 0.03125, %v1851_v59 }
0x11e4   : > { %v1853_v61 = vadd.f32 1e-05, %v1852_v60 }
0x11e6   : > { %2697 = vrsqrt.f32 %v1853_v61 }
0x11f3   : > { %v2698_v62 = vpop.eup %2697 }
0x11f4   : > { %v1855_v0 = vmul.f32 %v2698_v62, %v1847_v55 }
0x11f6   : > { %v1862_v3 = vmul.f32 %v2302_v63, %v1855_v0 }
0x11f8   : > { %v1869_v4 = vadd.f32 %v2303_v2, %v1862_v3 }
0x11fa   : > { %v1870_v5 = vpack.c.bf16 %v1869_v4, %v1869_v4 }
0x11fc   : > { %2503 = vmatmul.mubr.msk.bf16.vlgmr.msra.gmra.mxu0 %vm730_vm2, %v1870_v5 }
0x12bc   : > { %v1933_v11 = vpop.f32.mrf.mxu0 }
0x12bd   : > { %v1934_v13 = vadd.f32 %v2308_v10, %v1933_v11 }
0x12be   : > { %v2504_v46 = vpop.f32.mrf.mxu0 }
0x12bf   : > { %v1939_v14 = vmul.f32 %v1934_v13, %v1934_v13 }
0x12c0   : > { %v1936_v15 = vpop.f32.mrf.mxu0 }
0x12c1   : > { %v1940_v16 = vmul.f32 %v1939_v14, %v1934_v13 }
0x12c2   : > { %v2505_v17 = vpop.f32.mrf.mxu0 }
0x12c3   : > { %v1941_v18 = vmul.f32 0.044715, %v1940_v16 }
0x12c5   : > { %v1942_v19 = vadd.f32 %v1941_v18, %v1934_v13 }
0x12c7   : > { %v1943_v20 = vmul.f32 0.7978846, %v1942_v19 }
0x12c9   : > { %2699 = vtanh.f32 %v1943_v20 }
0x12d6   : > { %v2700_v21 = vpop.eup %2699 }
0x12d7   : > { %v1945_v22 = vadd.f32 1.0, %v2700_v21 }
0x12d9   : > { %v1946_v1 = vmul.f32 0.5, %v1945_v22 }
0x12db   : > { %v1947_v24 = vmul.f32 %v1946_v1, %v1934_v13 }
0x12dd   : > { %v1948_v25 = vpack.c.bf16 %v1947_v24, %v1947_v24 }
0x12df   : > { %2515 = vmatmul.mubr.msk.bf16.vlgmr.msra.gmra.mxu1 %vm1359_vm6, %v1948_v25 }
0x139f   : > { %v2027_v27 = vpop.f32.mrf.mxu1 }
0x13a0   : > { %v2028_v28 = vadd.f32 %v2321_v26, %v2027_v27 }
0x13a1   : > { %v2516_v29 = vpop.f32.mrf.mxu1 }
0x13a2   : > { %v2033_v30 = vadd.f32 %v2028_v28, %v1838_v50 }
0x13a3   : > { %v2030_v31 = vpop.f32.mrf.mxu1 }
0x13a4   : > { %v2036_v32 = vsel %vm730_vm2, %v2033_v30, 0.0 }
0x13a5   : > { %2037 = vadd.xlane.f32.xlu1 %v2036_v32  ;;  %v2517_v33 = vpop.f32.mrf.mxu1 }
0x142e   : > { %v2038_v34 = vpop.xlane.xlu1 %2037 }
0x142f   : > { %v2039_v35 = vmul.f32 0.03125, %v2038_v34 }
0x1431   : > { %v2040_v36 = vsub.f32 %v2033_v30, %v2039_v35 }
0x1433   : > { %v2041_v37 = vmul.f32 %v2040_v36, %v2040_v36 }
0x1435   : > { %v2042_v38 = vsel %vm730_vm2, %v2041_v37, 0.0 }
0x1436   : > { %2043 = vadd.xlane.f32.xlu0 %v2042_v38 }
0x14bf   : > { %v2044_v39 = vpop.xlane.xlu0 %2043 }
0x14c0   : > { %v2045_v40 = vmul.f32 0.03125, %v2044_v39 }
0x14c2   : > { %v2046_v41 = vadd.f32 1e-05, %v2045_v40 }
0x14c4   : > { %2701 = vrsqrt.f32 %v2046_v41 }
0x14d1   : > { %v2702_v42 = vpop.eup %2701 }
0x14d2   : > { %v2048_v44 = vmul.f32 %v2702_v42, %v2040_v36 }
0x14d4   : > { %v2055_v47 = vmul.f32 %v2327_v43, %v2048_v44 }
0x14d6   : > { %v2062_v48 = vadd.f32 %v2328_v45, %v2055_v47 }
0x14d8   : > { %2063 = vst.msk [vmem:[%s694_s22] sm:$0xff] %vm730_vm2, %v2062_v48 }
0x14d9   : > { %2924 = shalt.err (!%p2921_p2)
}
0x14da   : > { %s2925_s30 = scalar_lea.hbm %s2076_s19, 128  ;;  %s2929_s27 = scalar_lea.hbm %s3605_s24, 256 }
0x14db   : > { %p2926_p12 = scmp.ne.s32.totalorder %s2076_s19, %s2925_s30  ;;  %p2930_p4 = scmp.lt.s32.totalorder %s2076_s19, %s3605_s24 }
0x14dc   : > { %p2931_p6 = scmp.lt.s32.totalorder %s2929_s27, %s2925_s30 }
0x14dd   : > { %p2927_p10 = pnand %p2926_p12, %p3147_p5 }
0x14de   : > { %p2932_p9 = por %p2931_p6, %p2930_p4 }
0x14df   : > { %p2928_p7 = pneg %p2927_p10 }
0x14e1   : > { %p2933_p11 = pnand %p2932_p9, %p2928_p7 }
0x14e3   : > { %2936 = shalt.err (!%p2933_p11)
}
0x14e4   : > { %2550 = dma.vmem_to_hbm [thread:$0]  (%p3147_p5), %s2079_s20, 128, %s2076_s19, %s2065_s1  }
0x14e5 PF: > { %s3606_s29 = sld [smem:[#allocation25_spill]] }
0x14e6   : > { %s3607_s21 = sld [smem:[#allocation23_spill]] }
0x14e7   : > { %s3608_s26 = sld [smem:[#allocation28_spill]] }
0x14eb   : > { %p2597_p8 = scmp.ge.s32.totalorder %s3606_s29, 2 }
0x14ec   : > { %s2090_s18 = sand.u32 1, %s3607_s21  }
0x14ed   : > { %p3609_p13 = scmp.ne.s32.totalorder %s3608_s26, 0  ;;  %s2091_s0 = scalar_lea.sflag [#allocation4], %s2090_s18 }
0x14ef   : > { %p2578_p0 = pnand %p2597_p8, %p3609_p13 }
0x14f1   : > { %p2579_p3 = pneg %p2578_p0 }
0x14f3   : > { %2974 = dma.done.wait (%p2579_p3), %s2091_s0, 128  }
0x14f4   : > { %2976 = vsyncadd (%p2579_p3), %s2091_s0, 4294967168  ;;  %s3610_s30 = sld [smem:[#allocation26_spill]]  ;;  %s3613_s27 = smov %s2983_s28 }
0x14f5   : > { %s3611_s25 = sld [smem:[#allocation24_spill]] }
0x14f6   : > { %s3612_s29 = sld [smem:[#allocation27_spill]] }
0x14fa   : > { %p33_p1 = scmp.ge.s32.totalorder %s3610_s30, 4  }
0x14fb   : > { %s3614_s28 = smov %s3611_s25 }
0x14fc   :  { %35 = sbr.rel (!%p33_p1) target bundleno = 14 (0xe), region = 175 }
0x1501   :  { %2096 = vsyncpa [#allocation3], 1 }
0x1502   :  { %2098 = vsyncpa [#allocation3 + $0x1], 1 }
0x1503   :  { %2099 = vsyncpa [#allocation6], 1 }
0x1504   :  { %2100 = vsyncpa [#allocation9], 1 }
0x1505   :  { %2101 = vsyncpa [#allocation12], 1 }
0x1506   :  { %2102 = vsyncpa [#allocation15], 1 }
0x1507   :  { %2103 = vsyncpa [#allocation4], 1 }
0x1508   :  { %2105 = vsyncpa [#allocation4 + $0x1], 1 }

</bundles_post_ra>
